<compile_context>
chip_gen: v6e
topology: v6e:2x2x1
jax: 0.10.0
libtpu: 0.0.40
codegen_flags: <defaults>
</compile_context>

<pallas_src>
import jax
import jax.numpy as jnp
from jax import lax
from jax.experimental import pallas as pl
from jax.experimental.pallas import tpu as pltpu


_RING = 8  # number of row-copy DMAs kept in flight per grid step


def _gather_rows_kernel(idx_ref, x_hbm, o_ref, sem):
    """idx_ref: SMEM (B, K_pad) int32 (scalar-prefetched kept-row indices).
       x_hbm:   full (B, N, D) array left in HBM (memory_space=pl.ANY).
       o_ref:   VMEM output block (1, K_pad, D) for the current batch element.
       sem:     ring of DMA semaphores, shape (_RING,)."""
    b = pl.program_id(0)
    k_pad = o_ref.shape[1]
    ring = sem.shape[0]
    n_tail = min(ring, k_pad)

    def start_row(k, slot):
        pltpu.make_async_copy(
            x_hbm.at[b, pl.ds(idx_ref[b, k], 1), :],
            o_ref.at[0, pl.ds(k, 1), :],
            sem.at[slot],
        ).start()

    def wait_slot(slot):
        # Every row copy transfers the same (1, D) tile, so a fixed-shape
        # descriptor is enough to retire one completion on this slot.
        pltpu.make_async_copy(
            x_hbm.at[b, pl.ds(0, 1), :],
            o_ref.at[0, pl.ds(0, 1), :],
            sem.at[slot],
        ).wait()

    def body(k, carry):
        slot = k % ring

        @pl.when(k >= ring)
        def _():
            # Retire the copy issued `ring` iterations ago before reusing its slot.
            wait_slot(slot)

        start_row(k, slot)
        return carry

    # Capped unroll: keeps LLO scheduling visibility without code bloat for large K.
    lax.fori_loop(0, k_pad, body, 0, unroll=min(8, k_pad))

    # Drain the last min(ring, k_pad) outstanding copies before the block is
    # written back to HBM.
    def drain(i, carry):
        wait_slot((k_pad - n_tail + i) % ring)
        return carry

    lax.fori_loop(0, n_tail, drain, 0, unroll=True)


def patch_dropout_gather(x, patch_indices_keep):
    """out[b, k, :] = x[b, patch_indices_keep[b, k], :] via a per-row DMA gather."""
    b, n, d = x.shape
    k = patch_indices_keep.shape[1]
    k_pad = ((k + 7) // 8) * 8  # sublane-dense output block

    idx = patch_indices_keep.astype(jnp.int32)
    if k_pad != k:
        idx = jnp.pad(idx, ((0, 0), (0, k_pad - k)))  # padded slots re-gather row 0

    grid_spec = pltpu.PrefetchScalarGridSpec(
        num_scalar_prefetch=1,
        grid=(b,),
        # x never enters VMEM wholesale: only the kept rows are DMA'd on demand.
        in_specs=[pl.BlockSpec(memory_space=pl.ANY)],
        out_specs=pl.BlockSpec((1, k_pad, d), lambda bi, idx_ref: (bi, 0, 0)),
        scratch_shapes=[pltpu.SemaphoreType.DMA((_RING,))],
    )

    out = pl.pallas_call(
        _gather_rows_kernel,
        out_shape=jax.ShapeDtypeStruct((b, k_pad, d), x.dtype),
        grid_spec=grid_spec,
        compiler_params=pltpu.CompilerParams(
            dimension_semantics=("parallel",)),  # v7x: shard batch over both TCs
    )(idx, x)
    return out[:, :k, :] if k_pad != k else out


class PatchDropout:
    """JAX/Pallas port of the PyTorch PatchDropout module (no parameters)."""

    def __init__(self, prob):
        assert 0 <= prob < 1.0
        self.prob = prob
        self.training = True

    def __call__(self, x, key, force_keep_all=False):
        if not self.training or self.prob == 0.0 or force_keep_all:
            return x
        b, n, _ = x.shape
        num_patches_keep = max(1, int(n * (1 - self.prob)))
        # torch.randn(b, n).topk(K, dim=-1).indices -> lax.top_k of gaussian scores.
        scores = jax.random.normal(key, (b, n), dtype=jnp.float32)
        _, patch_indices_keep = lax.top_k(scores, num_patches_keep)
        return patch_dropout_gather(x, patch_indices_keep)


if __name__ == "__main__":
    key = jax.random.PRNGKey(0)
    k_x, k_drop = jax.random.split(key)

    # Lane-dense D (=128); prob=0.6 on N=16 gives K=6 so the pad-to-8 path is exercised.
    B, N, D = 2, 16, 128
    x = jax.random.normal(k_x, (B, N, D), dtype=jnp.float32)

    module = PatchDropout(prob=0.6)
    out = jax.block_until_ready(module(x, k_drop))

    # Reference check against a plain-JAX gather with the same indices.
    num_keep = max(1, int(N * (1 - module.prob)))
    scores = jax.random.normal(k_drop, (B, N), dtype=jnp.float32)
    _, idx = lax.top_k(scores, num_keep)
    ref = jnp.take_along_axis(x, idx[:, :, None], axis=1)

    assert out.shape == (B, num_keep, D), out.shape
    assert jnp.array_equal(out, ref), "Pallas DMA gather mismatch vs reference"

    # Eval / force_keep_all paths return x unchanged.
    module.training = False
    assert jnp.array_equal(module(x, k_drop), x)
    module.training = True
    assert jnp.array_equal(module(x, k_drop, force_keep_all=True), x)

    print("KERNEL_OK")
</pallas_src>

<mosaic_0001>
module attributes {stable_mosaic.version = 11 : i64} {
  func.func @_gather_rows_kernel(%arg0: i32, %arg1: memref<2x8xi32, #tpu.memory_space<smem>>, %arg2: memref<2x16x128xf32, #tpu.memory_space<any>>, %arg3: memref<1x8x128xf32, #tpu.memory_space<vmem>>, %arg4: memref<8x!tpu.dma_semaphore, #tpu.memory_space<semaphore_mem>>) attributes {dimension_semantics = [#tpu.dimension_semantics<parallel>], iteration_bounds = array<i64: 2>, scalar_prefetch = 1 : i64, scratch_operands = 1 : i64, tpu.core_type = #tpu.core_type<tc>, window_params = [{}, {transform_indices = @transform_1, window_bounds = array<i64: 1, 8, 128>}]} {
    %c0_i32 = arith.constant 0 : i32
    %c8_i32 = arith.constant 8 : i32
    %c0_i32_0 = arith.constant 0 : i32
    %0 = arith.cmpi eq, %c8_i32, %c0_i32_0 : i32
    %c1_i32 = arith.constant 1 : i32
    %1 = arith.select %0, %c1_i32, %c8_i32 : i32
    %2 = arith.remsi %c0_i32, %1 : i32
    %c0_i32_1 = arith.constant 0 : i32
    %3 = arith.cmpi ne, %2, %c0_i32_1 : i32
    %c0_i32_2 = arith.constant 0 : i32
    %4 = arith.cmpi slt, %2, %c0_i32_2 : i32
    %c0_i32_3 = arith.constant 0 : i32
    %5 = arith.cmpi slt, %1, %c0_i32_3 : i32
    %6 = arith.xori %4, %5 : i1
    %7 = arith.andi %6, %3 : i1
    %8 = arith.addi %2, %1 : i32
    %9 = arith.select %7, %8, %2 : i32
    %c8_i32_4 = arith.constant 8 : i32
    %10 = arith.cmpi sge, %c0_i32, %c8_i32_4 : i32
    %11 = arith.extui %10 : i1 to i32
    %c0_i32_5 = arith.constant 0 : i32
    %12 = arith.cmpi ne, %11, %c0_i32_5 : i32
    scf.if %12 {
      %c0_i32_193 = arith.constant 0 : i32
      %c0_i32_194 = arith.constant 0 : i32
      %c0_i32_195 = arith.constant 0 : i32
      %312 = tpu.memref_slice %arg2[%arg0, %c0_i32_194, %c0_i32_195] : memref<2x16x128xf32, #tpu.memory_space<any>> -> memref<1x1x128xf32, #tpu.memory_space<any>>
      %313 = tpu.memref_squeeze %312 : memref<1x1x128xf32, #tpu.memory_space<any>> -> memref<1x128xf32, #tpu.memory_space<any>>
      %c0_i32_196 = arith.constant 0 : i32
      %c0_i32_197 = arith.constant 0 : i32
      %314 = tpu.memref_slice %arg3[%c0_i32_193, %c0_i32_196, %c0_i32_197] : memref<1x8x128xf32, #tpu.memory_space<vmem>> -> memref<1x1x128xf32, #tpu.memory_space<vmem>>
      %315 = tpu.memref_squeeze %314 : memref<1x1x128xf32, #tpu.memory_space<vmem>> -> memref<1x128xf32, #tpu.memory_space<vmem>>
      %316 = tpu.memref_slice %arg4[%9] : memref<8x!tpu.dma_semaphore, #tpu.memory_space<semaphore_mem>> -> memref<1x!tpu.dma_semaphore, #tpu.memory_space<semaphore_mem>>
      %317 = tpu.memref_squeeze %316 : memref<1x!tpu.dma_semaphore, #tpu.memory_space<semaphore_mem>> -> memref<!tpu.dma_semaphore, #tpu.memory_space<semaphore_mem>>
      tpu.wait_dma2 semaphore(%317 : memref<!tpu.dma_semaphore, #tpu.memory_space<semaphore_mem>>) src(%313 : memref<1x128xf32, #tpu.memory_space<any>>) dst(%315 : memref<1x128xf32, #tpu.memory_space<vmem>>)
    } else {
    }
    %13 = arith.index_cast %arg0 : i32 to index
    %14 = arith.index_cast %c0_i32 : i32 to index
    %15 = memref.load %arg1[%13, %14] : memref<2x8xi32, #tpu.memory_space<smem>>
    %c0_i32_6 = arith.constant 0 : i32
    %c0_i32_7 = arith.constant 0 : i32
    %16 = tpu.memref_slice %arg2[%arg0, %15, %c0_i32_7] : memref<2x16x128xf32, #tpu.memory_space<any>> -> memref<1x1x128xf32, #tpu.memory_space<any>>
    %17 = tpu.memref_squeeze %16 : memref<1x1x128xf32, #tpu.memory_space<any>> -> memref<1x128xf32, #tpu.memory_space<any>>
    %c0_i32_8 = arith.constant 0 : i32
    %18 = tpu.memref_slice %arg3[%c0_i32_6, %c0_i32, %c0_i32_8] : memref<1x8x128xf32, #tpu.memory_space<vmem>> -> memref<1x1x128xf32, #tpu.memory_space<vmem>>
    %19 = tpu.memref_squeeze %18 : memref<1x1x128xf32, #tpu.memory_space<vmem>> -> memref<1x128xf32, #tpu.memory_space<vmem>>
    %20 = tpu.memref_slice %arg4[%9] : memref<8x!tpu.dma_semaphore, #tpu.memory_space<semaphore_mem>> -> memref<1x!tpu.dma_semaphore, #tpu.memory_space<semaphore_mem>>
    %21 = tpu.memref_squeeze %20 : memref<1x!tpu.dma_semaphore, #tpu.memory_space<semaphore_mem>> -> memref<!tpu.dma_semaphore, #tpu.memory_space<semaphore_mem>>
    tpu.enqueue_dma source(%17 : memref<1x128xf32, #tpu.memory_space<any>>) target(%19 : memref<1x128xf32, #tpu.memory_space<vmem>>) target_semaphore(%21 : memref<!tpu.dma_semaphore, #tpu.memory_space<semaphore_mem>>)
    %c1_i32_9 = arith.constant 1 : i32
    %c8_i32_10 = arith.constant 8 : i32
    %c0_i32_11 = arith.constant 0 : i32
    %22 = arith.cmpi eq, %c8_i32_10, %c0_i32_11 : i32
    %c1_i32_12 = arith.constant 1 : i32
    %23 = arith.select %22, %c1_i32_12, %c8_i32_10 : i32
    %24 = arith.remsi %c1_i32_9, %23 : i32
    %c0_i32_13 = arith.constant 0 : i32
    %25 = arith.cmpi ne, %24, %c0_i32_13 : i32
    %c0_i32_14 = arith.constant 0 : i32
    %26 = arith.cmpi slt, %24, %c0_i32_14 : i32
    %c0_i32_15 = arith.constant 0 : i32
    %27 = arith.cmpi slt, %23, %c0_i32_15 : i32
    %28 = arith.xori %26, %27 : i1
    %29 = arith.andi %28, %25 : i1
    %30 = arith.addi %24, %23 : i32
    %31 = arith.select %29, %30, %24 : i32
    %c8_i32_16 = arith.constant 8 : i32
    %32 = arith.cmpi sge, %c1_i32_9, %c8_i32_16 : i32
    %33 = arith.extui %32 : i1 to i32
    %c0_i32_17 = arith.constant 0 : i32
    %34 = arith.cmpi ne, %33, %c0_i32_17 : i32
    scf.if %34 {
      %c0_i32_193 = arith.constant 0 : i32
      %c0_i32_194 = arith.constant 0 : i32
      %c0_i32_195 = arith.constant 0 : i32
      %312 = tpu.memref_slice %arg2[%arg0, %c0_i32_194, %c0_i32_195] : memref<2x16x128xf32, #tpu.memory_space<any>> -> memref<1x1x128xf32, #tpu.memory_space<any>>
      %313 = tpu.memref_squeeze %312 : memref<1x1x128xf32, #tpu.memory_space<any>> -> memref<1x128xf32, #tpu.memory_space<any>>
      %c0_i32_196 = arith.constant 0 : i32
      %c0_i32_197 = arith.constant 0 : i32
      %314 = tpu.memref_slice %arg3[%c0_i32_193, %c0_i32_196, %c0_i32_197] : memref<1x8x128xf32, #tpu.memory_space<vmem>> -> memref<1x1x128xf32, #tpu.memory_space<vmem>>
      %315 = tpu.memref_squeeze %314 : memref<1x1x128xf32, #tpu.memory_space<vmem>> -> memref<1x128xf32, #tpu.memory_space<vmem>>
      %316 = tpu.memref_slice %arg4[%31] : memref<8x!tpu.dma_semaphore, #tpu.memory_space<semaphore_mem>> -> memref<1x!tpu.dma_semaphore, #tpu.memory_space<semaphore_mem>>
      %317 = tpu.memref_squeeze %316 : memref<1x!tpu.dma_semaphore, #tpu.memory_space<semaphore_mem>> -> memref<!tpu.dma_semaphore, #tpu.memory_space<semaphore_mem>>
      tpu.wait_dma2 semaphore(%317 : memref<!tpu.dma_semaphore, #tpu.memory_space<semaphore_mem>>) src(%313 : memref<1x128xf32, #tpu.memory_space<any>>) dst(%315 : memref<1x128xf32, #tpu.memory_space<vmem>>)
    } else {
    }
    %35 = arith.index_cast %arg0 : i32 to index
    %36 = arith.index_cast %c1_i32_9 : i32 to index
    %37 = memref.load %arg1[%35, %36] : memref<2x8xi32, #tpu.memory_space<smem>>
    %c0_i32_18 = arith.constant 0 : i32
    %c0_i32_19 = arith.constant 0 : i32
    %38 = tpu.memref_slice %arg2[%arg0, %37, %c0_i32_19] : memref<2x16x128xf32, #tpu.memory_space<any>> -> memref<1x1x128xf32, #tpu.memory_space<any>>
    %39 = tpu.memref_squeeze %38 : memref<1x1x128xf32, #tpu.memory_space<any>> -> memref<1x128xf32, #tpu.memory_space<any>>
    %c0_i32_20 = arith.constant 0 : i32
    %40 = tpu.memref_slice %arg3[%c0_i32_18, %c1_i32_9, %c0_i32_20] : memref<1x8x128xf32, #tpu.memory_space<vmem>> -> memref<1x1x128xf32, #tpu.memory_space<vmem>>
    %41 = tpu.memref_squeeze %40 : memref<1x1x128xf32, #tpu.memory_space<vmem>> -> memref<1x128xf32, #tpu.memory_space<vmem>>
    %42 = tpu.memref_slice %arg4[%31] : memref<8x!tpu.dma_semaphore, #tpu.memory_space<semaphore_mem>> -> memref<1x!tpu.dma_semaphore, #tpu.memory_space<semaphore_mem>>
    %43 = tpu.memref_squeeze %42 : memref<1x!tpu.dma_semaphore, #tpu.memory_space<semaphore_mem>> -> memref<!tpu.dma_semaphore, #tpu.memory_space<semaphore_mem>>
    tpu.enqueue_dma source(%39 : memref<1x128xf32, #tpu.memory_space<any>>) target(%41 : memref<1x128xf32, #tpu.memory_space<vmem>>) target_semaphore(%43 : memref<!tpu.dma_semaphore, #tpu.memory_space<semaphore_mem>>)
    %c2_i32 = arith.constant 2 : i32
    %c8_i32_21 = arith.constant 8 : i32
    %c0_i32_22 = arith.constant 0 : i32
    %44 = arith.cmpi eq, %c8_i32_21, %c0_i32_22 : i32
    %c1_i32_23 = arith.constant 1 : i32
    %45 = arith.select %44, %c1_i32_23, %c8_i32_21 : i32
    %46 = arith.remsi %c2_i32, %45 : i32
    %c0_i32_24 = arith.constant 0 : i32
    %47 = arith.cmpi ne, %46, %c0_i32_24 : i32
    %c0_i32_25 = arith.constant 0 : i32
    %48 = arith.cmpi slt, %46, %c0_i32_25 : i32
    %c0_i32_26 = arith.constant 0 : i32
    %49 = arith.cmpi slt, %45, %c0_i32_26 : i32
    %50 = arith.xori %48, %49 : i1
    %51 = arith.andi %50, %47 : i1
    %52 = arith.addi %46, %45 : i32
    %53 = arith.select %51, %52, %46 : i32
    %c8_i32_27 = arith.constant 8 : i32
    %54 = arith.cmpi sge, %c2_i32, %c8_i32_27 : i32
    %55 = arith.extui %54 : i1 to i32
    %c0_i32_28 = arith.constant 0 : i32
    %56 = arith.cmpi ne, %55, %c0_i32_28 : i32
    scf.if %56 {
      %c0_i32_193 = arith.constant 0 : i32
      %c0_i32_194 = arith.constant 0 : i32
      %c0_i32_195 = arith.constant 0 : i32
      %312 = tpu.memref_slice %arg2[%arg0, %c0_i32_194, %c0_i32_195] : memref<2x16x128xf32, #tpu.memory_space<any>> -> memref<1x1x128xf32, #tpu.memory_space<any>>
      %313 = tpu.memref_squeeze %312 : memref<1x1x128xf32, #tpu.memory_space<any>> -> memref<1x128xf32, #tpu.memory_space<any>>
      %c0_i32_196 = arith.constant 0 : i32
      %c0_i32_197 = arith.constant 0 : i32
      %314 = tpu.memref_slice %arg3[%c0_i32_193, %c0_i32_196, %c0_i32_197] : memref<1x8x128xf32, #tpu.memory_space<vmem>> -> memref<1x1x128xf32, #tpu.memory_space<vmem>>
      %315 = tpu.memref_squeeze %314 : memref<1x1x128xf32, #tpu.memory_space<vmem>> -> memref<1x128xf32, #tpu.memory_space<vmem>>
      %316 = tpu.memref_slice %arg4[%53] : memref<8x!tpu.dma_semaphore, #tpu.memory_space<semaphore_mem>> -> memref<1x!tpu.dma_semaphore, #tpu.memory_space<semaphore_mem>>
      %317 = tpu.memref_squeeze %316 : memref<1x!tpu.dma_semaphore, #tpu.memory_space<semaphore_mem>> -> memref<!tpu.dma_semaphore, #tpu.memory_space<semaphore_mem>>
      tpu.wait_dma2 semaphore(%317 : memref<!tpu.dma_semaphore, #tpu.memory_space<semaphore_mem>>) src(%313 : memref<1x128xf32, #tpu.memory_space<any>>) dst(%315 : memref<1x128xf32, #tpu.memory_space<vmem>>)
    } else {
    }
    %57 = arith.index_cast %arg0 : i32 to index
    %58 = arith.index_cast %c2_i32 : i32 to index
    %59 = memref.load %arg1[%57, %58] : memref<2x8xi32, #tpu.memory_space<smem>>
    %c0_i32_29 = arith.constant 0 : i32
    %c0_i32_30 = arith.constant 0 : i32
    %60 = tpu.memref_slice %arg2[%arg0, %59, %c0_i32_30] : memref<2x16x128xf32, #tpu.memory_space<any>> -> memref<1x1x128xf32, #tpu.memory_space<any>>
    %61 = tpu.memref_squeeze %60 : memref<1x1x128xf32, #tpu.memory_space<any>> -> memref<1x128xf32, #tpu.memory_space<any>>
    %c0_i32_31 = arith.constant 0 : i32
    %62 = tpu.memref_slice %arg3[%c0_i32_29, %c2_i32, %c0_i32_31] : memref<1x8x128xf32, #tpu.memory_space<vmem>> -> memref<1x1x128xf32, #tpu.memory_space<vmem>>
    %63 = tpu.memref_squeeze %62 : memref<1x1x128xf32, #tpu.memory_space<vmem>> -> memref<1x128xf32, #tpu.memory_space<vmem>>
    %64 = tpu.memref_slice %arg4[%53] : memref<8x!tpu.dma_semaphore, #tpu.memory_space<semaphore_mem>> -> memref<1x!tpu.dma_semaphore, #tpu.memory_space<semaphore_mem>>
    %65 = tpu.memref_squeeze %64 : memref<1x!tpu.dma_semaphore, #tpu.memory_space<semaphore_mem>> -> memref<!tpu.dma_semaphore, #tpu.memory_space<semaphore_mem>>
    tpu.enqueue_dma source(%61 : memref<1x128xf32, #tpu.memory_space<any>>) target(%63 : memref<1x128xf32, #tpu.memory_space<vmem>>) target_semaphore(%65 : memref<!tpu.dma_semaphore, #tpu.memory_space<semaphore_mem>>)
    %c3_i32 = arith.constant 3 : i32
    %c8_i32_32 = arith.constant 8 : i32
    %c0_i32_33 = arith.constant 0 : i32
    %66 = arith.cmpi eq, %c8_i32_32, %c0_i32_33 : i32
    %c1_i32_34 = arith.constant 1 : i32
    %67 = arith.select %66, %c1_i32_34, %c8_i32_32 : i32
    %68 = arith.remsi %c3_i32, %67 : i32
    %c0_i32_35 = arith.constant 0 : i32
    %69 = arith.cmpi ne, %68, %c0_i32_35 : i32
    %c0_i32_36 = arith.constant 0 : i32
    %70 = arith.cmpi slt, %68, %c0_i32_36 : i32
    %c0_i32_37 = arith.constant 0 : i32
    %71 = arith.cmpi slt, %67, %c0_i32_37 : i32
    %72 = arith.xori %70, %71 : i1
    %73 = arith.andi %72, %69 : i1
    %74 = arith.addi %68, %67 : i32
    %75 = arith.select %73, %74, %68 : i32
    %c8_i32_38 = arith.constant 8 : i32
    %76 = arith.cmpi sge, %c3_i32, %c8_i32_38 : i32
    %77 = arith.extui %76 : i1 to i32
    %c0_i32_39 = arith.constant 0 : i32
    %78 = arith.cmpi ne, %77, %c0_i32_39 : i32
    scf.if %78 {
      %c0_i32_193 = arith.constant 0 : i32
      %c0_i32_194 = arith.constant 0 : i32
      %c0_i32_195 = arith.constant 0 : i32
      %312 = tpu.memref_slice %arg2[%arg0, %c0_i32_194, %c0_i32_195] : memref<2x16x128xf32, #tpu.memory_space<any>> -> memref<1x1x128xf32, #tpu.memory_space<any>>
      %313 = tpu.memref_squeeze %312 : memref<1x1x128xf32, #tpu.memory_space<any>> -> memref<1x128xf32, #tpu.memory_space<any>>
      %c0_i32_196 = arith.constant 0 : i32
      %c0_i32_197 = arith.constant 0 : i32
      %314 = tpu.memref_slice %arg3[%c0_i32_193, %c0_i32_196, %c0_i32_197] : memref<1x8x128xf32, #tpu.memory_space<vmem>> -> memref<1x1x128xf32, #tpu.memory_space<vmem>>
      %315 = tpu.memref_squeeze %314 : memref<1x1x128xf32, #tpu.memory_space<vmem>> -> memref<1x128xf32, #tpu.memory_space<vmem>>
      %316 = tpu.memref_slice %arg4[%75] : memref<8x!tpu.dma_semaphore, #tpu.memory_space<semaphore_mem>> -> memref<1x!tpu.dma_semaphore, #tpu.memory_space<semaphore_mem>>
      %317 = tpu.memref_squeeze %316 : memref<1x!tpu.dma_semaphore, #tpu.memory_space<semaphore_mem>> -> memref<!tpu.dma_semaphore, #tpu.memory_space<semaphore_mem>>
      tpu.wait_dma2 semaphore(%317 : memref<!tpu.dma_semaphore, #tpu.memory_space<semaphore_mem>>) src(%313 : memref<1x128xf32, #tpu.memory_space<any>>) dst(%315 : memref<1x128xf32, #tpu.memory_space<vmem>>)
    } else {
    }
    %79 = arith.index_cast %arg0 : i32 to index
    %80 = arith.index_cast %c3_i32 : i32 to index
    %81 = memref.load %arg1[%79, %80] : memref<2x8xi32, #tpu.memory_space<smem>>
    %c0_i32_40 = arith.constant 0 : i32
    %c0_i32_41 = arith.constant 0 : i32
    %82 = tpu.memref_slice %arg2[%arg0, %81, %c0_i32_41] : memref<2x16x128xf32, #tpu.memory_space<any>> -> memref<1x1x128xf32, #tpu.memory_space<any>>
    %83 = tpu.memref_squeeze %82 : memref<1x1x128xf32, #tpu.memory_space<any>> -> memref<1x128xf32, #tpu.memory_space<any>>
    %c0_i32_42 = arith.constant 0 : i32
    %84 = tpu.memref_slice %arg3[%c0_i32_40, %c3_i32, %c0_i32_42] : memref<1x8x128xf32, #tpu.memory_space<vmem>> -> memref<1x1x128xf32, #tpu.memory_space<vmem>>
    %85 = tpu.memref_squeeze %84 : memref<1x1x128xf32, #tpu.memory_space<vmem>> -> memref<1x128xf32, #tpu.memory_space<vmem>>
    %86 = tpu.memref_slice %arg4[%75] : memref<8x!tpu.dma_semaphore, #tpu.memory_space<semaphore_mem>> -> memref<1x!tpu.dma_semaphore, #tpu.memory_space<semaphore_mem>>
    %87 = tpu.memref_squeeze %86 : memref<1x!tpu.dma_semaphore, #tpu.memory_space<semaphore_mem>> -> memref<!tpu.dma_semaphore, #tpu.memory_space<semaphore_mem>>
    tpu.enqueue_dma source(%83 : memref<1x128xf32, #tpu.memory_space<any>>) target(%85 : memref<1x128xf32, #tpu.memory_space<vmem>>) target_semaphore(%87 : memref<!tpu.dma_semaphore, #tpu.memory_space<semaphore_mem>>)
    %c4_i32 = arith.constant 4 : i32
    %c8_i32_43 = arith.constant 8 : i32
    %c0_i32_44 = arith.constant 0 : i32
    %88 = arith.cmpi eq, %c8_i32_43, %c0_i32_44 : i32
    %c1_i32_45 = arith.constant 1 : i32
    %89 = arith.select %88, %c1_i32_45, %c8_i32_43 : i32
    %90 = arith.remsi %c4_i32, %89 : i32
    %c0_i32_46 = arith.constant 0 : i32
    %91 = arith.cmpi ne, %90, %c0_i32_46 : i32
    %c0_i32_47 = arith.constant 0 : i32
    %92 = arith.cmpi slt, %90, %c0_i32_47 : i32
    %c0_i32_48 = arith.constant 0 : i32
    %93 = arith.cmpi slt, %89, %c0_i32_48 : i32
    %94 = arith.xori %92, %93 : i1
    %95 = arith.andi %94, %91 : i1
    %96 = arith.addi %90, %89 : i32
    %97 = arith.select %95, %96, %90 : i32
    %c8_i32_49 = arith.constant 8 : i32
    %98 = arith.cmpi sge, %c4_i32, %c8_i32_49 : i32
    %99 = arith.extui %98 : i1 to i32
    %c0_i32_50 = arith.constant 0 : i32
    %100 = arith.cmpi ne, %99, %c0_i32_50 : i32
    scf.if %100 {
      %c0_i32_193 = arith.constant 0 : i32
      %c0_i32_194 = arith.constant 0 : i32
      %c0_i32_195 = arith.constant 0 : i32
      %312 = tpu.memref_slice %arg2[%arg0, %c0_i32_194, %c0_i32_195] : memref<2x16x128xf32, #tpu.memory_space<any>> -> memref<1x1x128xf32, #tpu.memory_space<any>>
      %313 = tpu.memref_squeeze %312 : memref<1x1x128xf32, #tpu.memory_space<any>> -> memref<1x128xf32, #tpu.memory_space<any>>
      %c0_i32_196 = arith.constant 0 : i32
      %c0_i32_197 = arith.constant 0 : i32
      %314 = tpu.memref_slice %arg3[%c0_i32_193, %c0_i32_196, %c0_i32_197] : memref<1x8x128xf32, #tpu.memory_space<vmem>> -> memref<1x1x128xf32, #tpu.memory_space<vmem>>
      %315 = tpu.memref_squeeze %314 : memref<1x1x128xf32, #tpu.memory_space<vmem>> -> memref<1x128xf32, #tpu.memory_space<vmem>>
      %316 = tpu.memref_slice %arg4[%97] : memref<8x!tpu.dma_semaphore, #tpu.memory_space<semaphore_mem>> -> memref<1x!tpu.dma_semaphore, #tpu.memory_space<semaphore_mem>>
      %317 = tpu.memref_squeeze %316 : memref<1x!tpu.dma_semaphore, #tpu.memory_space<semaphore_mem>> -> memref<!tpu.dma_semaphore, #tpu.memory_space<semaphore_mem>>
      tpu.wait_dma2 semaphore(%317 : memref<!tpu.dma_semaphore, #tpu.memory_space<semaphore_mem>>) src(%313 : memref<1x128xf32, #tpu.memory_space<any>>) dst(%315 : memref<1x128xf32, #tpu.memory_space<vmem>>)
    } else {
    }
    %101 = arith.index_cast %arg0 : i32 to index
    %102 = arith.index_cast %c4_i32 : i32 to index
    %103 = memref.load %arg1[%101, %102] : memref<2x8xi32, #tpu.memory_space<smem>>
    %c0_i32_51 = arith.constant 0 : i32
    %c0_i32_52 = arith.constant 0 : i32
    %104 = tpu.memref_slice %arg2[%arg0, %103, %c0_i32_52] : memref<2x16x128xf32, #tpu.memory_space<any>> -> memref<1x1x128xf32, #tpu.memory_space<any>>
    %105 = tpu.memref_squeeze %104 : memref<1x1x128xf32, #tpu.memory_space<any>> -> memref<1x128xf32, #tpu.memory_space<any>>
    %c0_i32_53 = arith.constant 0 : i32
    %106 = tpu.memref_slice %arg3[%c0_i32_51, %c4_i32, %c0_i32_53] : memref<1x8x128xf32, #tpu.memory_space<vmem>> -> memref<1x1x128xf32, #tpu.memory_space<vmem>>
    %107 = tpu.memref_squeeze %106 : memref<1x1x128xf32, #tpu.memory_space<vmem>> -> memref<1x128xf32, #tpu.memory_space<vmem>>
    %108 = tpu.memref_slice %arg4[%97] : memref<8x!tpu.dma_semaphore, #tpu.memory_space<semaphore_mem>> -> memref<1x!tpu.dma_semaphore, #tpu.memory_space<semaphore_mem>>
    %109 = tpu.memref_squeeze %108 : memref<1x!tpu.dma_semaphore, #tpu.memory_space<semaphore_mem>> -> memref<!tpu.dma_semaphore, #tpu.memory_space<semaphore_mem>>
    tpu.enqueue_dma source(%105 : memref<1x128xf32, #tpu.memory_space<any>>) target(%107 : memref<1x128xf32, #tpu.memory_space<vmem>>) target_semaphore(%109 : memref<!tpu.dma_semaphore, #tpu.memory_space<semaphore_mem>>)
    %c5_i32 = arith.constant 5 : i32
    %c8_i32_54 = arith.constant 8 : i32
    %c0_i32_55 = arith.constant 0 : i32
    %110 = arith.cmpi eq, %c8_i32_54, %c0_i32_55 : i32
    %c1_i32_56 = arith.constant 1 : i32
    %111 = arith.select %110, %c1_i32_56, %c8_i32_54 : i32
    %112 = arith.remsi %c5_i32, %111 : i32
    %c0_i32_57 = arith.constant 0 : i32
    %113 = arith.cmpi ne, %112, %c0_i32_57 : i32
    %c0_i32_58 = arith.constant 0 : i32
    %114 = arith.cmpi slt, %112, %c0_i32_58 : i32
    %c0_i32_59 = arith.constant 0 : i32
    %115 = arith.cmpi slt, %111, %c0_i32_59 : i32
    %116 = arith.xori %114, %115 : i1
    %117 = arith.andi %116, %113 : i1
    %118 = arith.addi %112, %111 : i32
    %119 = arith.select %117, %118, %112 : i32
    %c8_i32_60 = arith.constant 8 : i32
    %120 = arith.cmpi sge, %c5_i32, %c8_i32_60 : i32
    %121 = arith.extui %120 : i1 to i32
    %c0_i32_61 = arith.constant 0 : i32
    %122 = arith.cmpi ne, %121, %c0_i32_61 : i32
    scf.if %122 {
      %c0_i32_193 = arith.constant 0 : i32
      %c0_i32_194 = arith.constant 0 : i32
      %c0_i32_195 = arith.constant 0 : i32
      %312 = tpu.memref_slice %arg2[%arg0, %c0_i32_194, %c0_i32_195] : memref<2x16x128xf32, #tpu.memory_space<any>> -> memref<1x1x128xf32, #tpu.memory_space<any>>
      %313 = tpu.memref_squeeze %312 : memref<1x1x128xf32, #tpu.memory_space<any>> -> memref<1x128xf32, #tpu.memory_space<any>>
      %c0_i32_196 = arith.constant 0 : i32
      %c0_i32_197 = arith.constant 0 : i32
      %314 = tpu.memref_slice %arg3[%c0_i32_193, %c0_i32_196, %c0_i32_197] : memref<1x8x128xf32, #tpu.memory_space<vmem>> -> memref<1x1x128xf32, #tpu.memory_space<vmem>>
      %315 = tpu.memref_squeeze %314 : memref<1x1x128xf32, #tpu.memory_space<vmem>> -> memref<1x128xf32, #tpu.memory_space<vmem>>
      %316 = tpu.memref_slice %arg4[%119] : memref<8x!tpu.dma_semaphore, #tpu.memory_space<semaphore_mem>> -> memref<1x!tpu.dma_semaphore, #tpu.memory_space<semaphore_mem>>
      %317 = tpu.memref_squeeze %316 : memref<1x!tpu.dma_semaphore, #tpu.memory_space<semaphore_mem>> -> memref<!tpu.dma_semaphore, #tpu.memory_space<semaphore_mem>>
      tpu.wait_dma2 semaphore(%317 : memref<!tpu.dma_semaphore, #tpu.memory_space<semaphore_mem>>) src(%313 : memref<1x128xf32, #tpu.memory_space<any>>) dst(%315 : memref<1x128xf32, #tpu.memory_space<vmem>>)
    } else {
    }
    %123 = arith.index_cast %arg0 : i32 to index
    %124 = arith.index_cast %c5_i32 : i32 to index
    %125 = memref.load %arg1[%123, %124] : memref<2x8xi32, #tpu.memory_space<smem>>
    %c0_i32_62 = arith.constant 0 : i32
    %c0_i32_63 = arith.constant 0 : i32
    %126 = tpu.memref_slice %arg2[%arg0, %125, %c0_i32_63] : memref<2x16x128xf32, #tpu.memory_space<any>> -> memref<1x1x128xf32, #tpu.memory_space<any>>
    %127 = tpu.memref_squeeze %126 : memref<1x1x128xf32, #tpu.memory_space<any>> -> memref<1x128xf32, #tpu.memory_space<any>>
    %c0_i32_64 = arith.constant 0 : i32
    %128 = tpu.memref_slice %arg3[%c0_i32_62, %c5_i32, %c0_i32_64] : memref<1x8x128xf32, #tpu.memory_space<vmem>> -> memref<1x1x128xf32, #tpu.memory_space<vmem>>
    %129 = tpu.memref_squeeze %128 : memref<1x1x128xf32, #tpu.memory_space<vmem>> -> memref<1x128xf32, #tpu.memory_space<vmem>>
    %130 = tpu.memref_slice %arg4[%119] : memref<8x!tpu.dma_semaphore, #tpu.memory_space<semaphore_mem>> -> memref<1x!tpu.dma_semaphore, #tpu.memory_space<semaphore_mem>>
    %131 = tpu.memref_squeeze %130 : memref<1x!tpu.dma_semaphore, #tpu.memory_space<semaphore_mem>> -> memref<!tpu.dma_semaphore, #tpu.memory_space<semaphore_mem>>
    tpu.enqueue_dma source(%127 : memref<1x128xf32, #tpu.memory_space<any>>) target(%129 : memref<1x128xf32, #tpu.memory_space<vmem>>) target_semaphore(%131 : memref<!tpu.dma_semaphore, #tpu.memory_space<semaphore_mem>>)
    %c6_i32 = arith.constant 6 : i32
    %c8_i32_65 = arith.constant 8 : i32
    %c0_i32_66 = arith.constant 0 : i32
    %132 = arith.cmpi eq, %c8_i32_65, %c0_i32_66 : i32
    %c1_i32_67 = arith.constant 1 : i32
    %133 = arith.select %132, %c1_i32_67, %c8_i32_65 : i32
    %134 = arith.remsi %c6_i32, %133 : i32
    %c0_i32_68 = arith.constant 0 : i32
    %135 = arith.cmpi ne, %134, %c0_i32_68 : i32
    %c0_i32_69 = arith.constant 0 : i32
    %136 = arith.cmpi slt, %134, %c0_i32_69 : i32
    %c0_i32_70 = arith.constant 0 : i32
    %137 = arith.cmpi slt, %133, %c0_i32_70 : i32
    %138 = arith.xori %136, %137 : i1
    %139 = arith.andi %138, %135 : i1
    %140 = arith.addi %134, %133 : i32
    %141 = arith.select %139, %140, %134 : i32
    %c8_i32_71 = arith.constant 8 : i32
    %142 = arith.cmpi sge, %c6_i32, %c8_i32_71 : i32
    %143 = arith.extui %142 : i1 to i32
    %c0_i32_72 = arith.constant 0 : i32
    %144 = arith.cmpi ne, %143, %c0_i32_72 : i32
    scf.if %144 {
      %c0_i32_193 = arith.constant 0 : i32
      %c0_i32_194 = arith.constant 0 : i32
      %c0_i32_195 = arith.constant 0 : i32
      %312 = tpu.memref_slice %arg2[%arg0, %c0_i32_194, %c0_i32_195] : memref<2x16x128xf32, #tpu.memory_space<any>> -> memref<1x1x128xf32, #tpu.memory_space<any>>
      %313 = tpu.memref_squeeze %312 : memref<1x1x128xf32, #tpu.memory_space<any>> -> memref<1x128xf32, #tpu.memory_space<any>>
      %c0_i32_196 = arith.constant 0 : i32
      %c0_i32_197 = arith.constant 0 : i32
      %314 = tpu.memref_slice %arg3[%c0_i32_193, %c0_i32_196, %c0_i32_197] : memref<1x8x128xf32, #tpu.memory_space<vmem>> -> memref<1x1x128xf32, #tpu.memory_space<vmem>>
      %315 = tpu.memref_squeeze %314 : memref<1x1x128xf32, #tpu.memory_space<vmem>> -> memref<1x128xf32, #tpu.memory_space<vmem>>
      %316 = tpu.memref_slice %arg4[%141] : memref<8x!tpu.dma_semaphore, #tpu.memory_space<semaphore_mem>> -> memref<1x!tpu.dma_semaphore, #tpu.memory_space<semaphore_mem>>
      %317 = tpu.memref_squeeze %316 : memref<1x!tpu.dma_semaphore, #tpu.memory_space<semaphore_mem>> -> memref<!tpu.dma_semaphore, #tpu.memory_space<semaphore_mem>>
      tpu.wait_dma2 semaphore(%317 : memref<!tpu.dma_semaphore, #tpu.memory_space<semaphore_mem>>) src(%313 : memref<1x128xf32, #tpu.memory_space<any>>) dst(%315 : memref<1x128xf32, #tpu.memory_space<vmem>>)
    } else {
    }
    %145 = arith.index_cast %arg0 : i32 to index
    %146 = arith.index_cast %c6_i32 : i32 to index
    %147 = memref.load %arg1[%145, %146] : memref<2x8xi32, #tpu.memory_space<smem>>
    %c0_i32_73 = arith.constant 0 : i32
    %c0_i32_74 = arith.constant 0 : i32
    %148 = tpu.memref_slice %arg2[%arg0, %147, %c0_i32_74] : memref<2x16x128xf32, #tpu.memory_space<any>> -> memref<1x1x128xf32, #tpu.memory_space<any>>
    %149 = tpu.memref_squeeze %148 : memref<1x1x128xf32, #tpu.memory_space<any>> -> memref<1x128xf32, #tpu.memory_space<any>>
    %c0_i32_75 = arith.constant 0 : i32
    %150 = tpu.memref_slice %arg3[%c0_i32_73, %c6_i32, %c0_i32_75] : memref<1x8x128xf32, #tpu.memory_space<vmem>> -> memref<1x1x128xf32, #tpu.memory_space<vmem>>
    %151 = tpu.memref_squeeze %150 : memref<1x1x128xf32, #tpu.memory_space<vmem>> -> memref<1x128xf32, #tpu.memory_space<vmem>>
    %152 = tpu.memref_slice %arg4[%141] : memref<8x!tpu.dma_semaphore, #tpu.memory_space<semaphore_mem>> -> memref<1x!tpu.dma_semaphore, #tpu.memory_space<semaphore_mem>>
    %153 = tpu.memref_squeeze %152 : memref<1x!tpu.dma_semaphore, #tpu.memory_space<semaphore_mem>> -> memref<!tpu.dma_semaphore, #tpu.memory_space<semaphore_mem>>
    tpu.enqueue_dma source(%149 : memref<1x128xf32, #tpu.memory_space<any>>) target(%151 : memref<1x128xf32, #tpu.memory_space<vmem>>) target_semaphore(%153 : memref<!tpu.dma_semaphore, #tpu.memory_space<semaphore_mem>>)
    %c7_i32 = arith.constant 7 : i32
    %c8_i32_76 = arith.constant 8 : i32
    %c0_i32_77 = arith.constant 0 : i32
    %154 = arith.cmpi eq, %c8_i32_76, %c0_i32_77 : i32
    %c1_i32_78 = arith.constant 1 : i32
    %155 = arith.select %154, %c1_i32_78, %c8_i32_76 : i32
    %156 = arith.remsi %c7_i32, %155 : i32
    %c0_i32_79 = arith.constant 0 : i32
    %157 = arith.cmpi ne, %156, %c0_i32_79 : i32
    %c0_i32_80 = arith.constant 0 : i32
    %158 = arith.cmpi slt, %156, %c0_i32_80 : i32
    %c0_i32_81 = arith.constant 0 : i32
    %159 = arith.cmpi slt, %155, %c0_i32_81 : i32
    %160 = arith.xori %158, %159 : i1
    %161 = arith.andi %160, %157 : i1
    %162 = arith.addi %156, %155 : i32
    %163 = arith.select %161, %162, %156 : i32
    %c8_i32_82 = arith.constant 8 : i32
    %164 = arith.cmpi sge, %c7_i32, %c8_i32_82 : i32
    %165 = arith.extui %164 : i1 to i32
    %c0_i32_83 = arith.constant 0 : i32
    %166 = arith.cmpi ne, %165, %c0_i32_83 : i32
    scf.if %166 {
      %c0_i32_193 = arith.constant 0 : i32
      %c0_i32_194 = arith.constant 0 : i32
      %c0_i32_195 = arith.constant 0 : i32
      %312 = tpu.memref_slice %arg2[%arg0, %c0_i32_194, %c0_i32_195] : memref<2x16x128xf32, #tpu.memory_space<any>> -> memref<1x1x128xf32, #tpu.memory_space<any>>
      %313 = tpu.memref_squeeze %312 : memref<1x1x128xf32, #tpu.memory_space<any>> -> memref<1x128xf32, #tpu.memory_space<any>>
      %c0_i32_196 = arith.constant 0 : i32
      %c0_i32_197 = arith.constant 0 : i32
      %314 = tpu.memref_slice %arg3[%c0_i32_193, %c0_i32_196, %c0_i32_197] : memref<1x8x128xf32, #tpu.memory_space<vmem>> -> memref<1x1x128xf32, #tpu.memory_space<vmem>>
      %315 = tpu.memref_squeeze %314 : memref<1x1x128xf32, #tpu.memory_space<vmem>> -> memref<1x128xf32, #tpu.memory_space<vmem>>
      %316 = tpu.memref_slice %arg4[%163] : memref<8x!tpu.dma_semaphore, #tpu.memory_space<semaphore_mem>> -> memref<1x!tpu.dma_semaphore, #tpu.memory_space<semaphore_mem>>
      %317 = tpu.memref_squeeze %316 : memref<1x!tpu.dma_semaphore, #tpu.memory_space<semaphore_mem>> -> memref<!tpu.dma_semaphore, #tpu.memory_space<semaphore_mem>>
      tpu.wait_dma2 semaphore(%317 : memref<!tpu.dma_semaphore, #tpu.memory_space<semaphore_mem>>) src(%313 : memref<1x128xf32, #tpu.memory_space<any>>) dst(%315 : memref<1x128xf32, #tpu.memory_space<vmem>>)
    } else {
    }
    %167 = arith.index_cast %arg0 : i32 to index
    %168 = arith.index_cast %c7_i32 : i32 to index
    %169 = memref.load %arg1[%167, %168] : memref<2x8xi32, #tpu.memory_space<smem>>
    %c0_i32_84 = arith.constant 0 : i32
    %c0_i32_85 = arith.constant 0 : i32
    %170 = tpu.memref_slice %arg2[%arg0, %169, %c0_i32_85] : memref<2x16x128xf32, #tpu.memory_space<any>> -> memref<1x1x128xf32, #tpu.memory_space<any>>
    %171 = tpu.memref_squeeze %170 : memref<1x1x128xf32, #tpu.memory_space<any>> -> memref<1x128xf32, #tpu.memory_space<any>>
    %c0_i32_86 = arith.constant 0 : i32
    %172 = tpu.memref_slice %arg3[%c0_i32_84, %c7_i32, %c0_i32_86] : memref<1x8x128xf32, #tpu.memory_space<vmem>> -> memref<1x1x128xf32, #tpu.memory_space<vmem>>
    %173 = tpu.memref_squeeze %172 : memref<1x1x128xf32, #tpu.memory_space<vmem>> -> memref<1x128xf32, #tpu.memory_space<vmem>>
    %174 = tpu.memref_slice %arg4[%163] : memref<8x!tpu.dma_semaphore, #tpu.memory_space<semaphore_mem>> -> memref<1x!tpu.dma_semaphore, #tpu.memory_space<semaphore_mem>>
    %175 = tpu.memref_squeeze %174 : memref<1x!tpu.dma_semaphore, #tpu.memory_space<semaphore_mem>> -> memref<!tpu.dma_semaphore, #tpu.memory_space<semaphore_mem>>
    tpu.enqueue_dma source(%171 : memref<1x128xf32, #tpu.memory_space<any>>) target(%173 : memref<1x128xf32, #tpu.memory_space<vmem>>) target_semaphore(%175 : memref<!tpu.dma_semaphore, #tpu.memory_space<semaphore_mem>>)
    %c8_i32_87 = arith.constant 8 : i32
    %c0_i32_88 = arith.constant 0 : i32
    %c0_i32_89 = arith.constant 0 : i32
    %176 = arith.addi %c0_i32_89, %c0_i32_88 : i32
    %c8_i32_90 = arith.constant 8 : i32
    %c0_i32_91 = arith.constant 0 : i32
    %177 = arith.cmpi eq, %c8_i32_90, %c0_i32_91 : i32
    %c1_i32_92 = arith.constant 1 : i32
    %178 = arith.select %177, %c1_i32_92, %c8_i32_90 : i32
    %179 = arith.remsi %176, %178 : i32
    %c0_i32_93 = arith.constant 0 : i32
    %180 = arith.cmpi ne, %179, %c0_i32_93 : i32
    %c0_i32_94 = arith.constant 0 : i32
    %181 = arith.cmpi slt, %179, %c0_i32_94 : i32
    %c0_i32_95 = arith.constant 0 : i32
    %182 = arith.cmpi slt, %178, %c0_i32_95 : i32
    %183 = arith.xori %181, %182 : i1
    %184 = arith.andi %183, %180 : i1
    %185 = arith.addi %179, %178 : i32
    %186 = arith.select %184, %185, %179 : i32
    %c0_i32_96 = arith.constant 0 : i32
    %c0_i32_97 = arith.constant 0 : i32
    %c0_i32_98 = arith.constant 0 : i32
    %187 = tpu.memref_slice %arg2[%arg0, %c0_i32_97, %c0_i32_98] : memref<2x16x128xf32, #tpu.memory_space<any>> -> memref<1x1x128xf32, #tpu.memory_space<any>>
    %188 = tpu.memref_squeeze %187 : memref<1x1x128xf32, #tpu.memory_space<any>> -> memref<1x128xf32, #tpu.memory_space<any>>
    %c0_i32_99 = arith.constant 0 : i32
    %c0_i32_100 = arith.constant 0 : i32
    %189 = tpu.memref_slice %arg3[%c0_i32_96, %c0_i32_99, %c0_i32_100] : memref<1x8x128xf32, #tpu.memory_space<vmem>> -> memref<1x1x128xf32, #tpu.memory_space<vmem>>
    %190 = tpu.memref_squeeze %189 : memref<1x1x128xf32, #tpu.memory_space<vmem>> -> memref<1x128xf32, #tpu.memory_space<vmem>>
    %191 = tpu.memref_slice %arg4[%186] : memref<8x!tpu.dma_semaphore, #tpu.memory_space<semaphore_mem>> -> memref<1x!tpu.dma_semaphore, #tpu.memory_space<semaphore_mem>>
    %192 = tpu.memref_squeeze %191 : memref<1x!tpu.dma_semaphore, #tpu.memory_space<semaphore_mem>> -> memref<!tpu.dma_semaphore, #tpu.memory_space<semaphore_mem>>
    tpu.wait_dma2 semaphore(%192 : memref<!tpu.dma_semaphore, #tpu.memory_space<semaphore_mem>>) src(%188 : memref<1x128xf32, #tpu.memory_space<any>>) dst(%190 : memref<1x128xf32, #tpu.memory_space<vmem>>)
    %c1_i32_101 = arith.constant 1 : i32
    %c0_i32_102 = arith.constant 0 : i32
    %193 = arith.addi %c0_i32_102, %c1_i32_101 : i32
    %c8_i32_103 = arith.constant 8 : i32
    %c0_i32_104 = arith.constant 0 : i32
    %194 = arith.cmpi eq, %c8_i32_103, %c0_i32_104 : i32
    %c1_i32_105 = arith.constant 1 : i32
    %195 = arith.select %194, %c1_i32_105, %c8_i32_103 : i32
    %196 = arith.remsi %193, %195 : i32
    %c0_i32_106 = arith.constant 0 : i32
    %197 = arith.cmpi ne, %196, %c0_i32_106 : i32
    %c0_i32_107 = arith.constant 0 : i32
    %198 = arith.cmpi slt, %196, %c0_i32_107 : i32
    %c0_i32_108 = arith.constant 0 : i32
    %199 = arith.cmpi slt, %195, %c0_i32_108 : i32
    %200 = arith.xori %198, %199 : i1
    %201 = arith.andi %200, %197 : i1
    %202 = arith.addi %196, %195 : i32
    %203 = arith.select %201, %202, %196 : i32
    %c0_i32_109 = arith.constant 0 : i32
    %c0_i32_110 = arith.constant 0 : i32
    %c0_i32_111 = arith.constant 0 : i32
    %204 = tpu.memref_slice %arg2[%arg0, %c0_i32_110, %c0_i32_111] : memref<2x16x128xf32, #tpu.memory_space<any>> -> memref<1x1x128xf32, #tpu.memory_space<any>>
    %205 = tpu.memref_squeeze %204 : memref<1x1x128xf32, #tpu.memory_space<any>> -> memref<1x128xf32, #tpu.memory_space<any>>
    %c0_i32_112 = arith.constant 0 : i32
    %c0_i32_113 = arith.constant 0 : i32
    %206 = tpu.memref_slice %arg3[%c0_i32_109, %c0_i32_112, %c0_i32_113] : memref<1x8x128xf32, #tpu.memory_space<vmem>> -> memref<1x1x128xf32, #tpu.memory_space<vmem>>
    %207 = tpu.memref_squeeze %206 : memref<1x1x128xf32, #tpu.memory_space<vmem>> -> memref<1x128xf32, #tpu.memory_space<vmem>>
    %208 = tpu.memref_slice %arg4[%203] : memref<8x!tpu.dma_semaphore, #tpu.memory_space<semaphore_mem>> -> memref<1x!tpu.dma_semaphore, #tpu.memory_space<semaphore_mem>>
    %209 = tpu.memref_squeeze %208 : memref<1x!tpu.dma_semaphore, #tpu.memory_space<semaphore_mem>> -> memref<!tpu.dma_semaphore, #tpu.memory_space<semaphore_mem>>
    tpu.wait_dma2 semaphore(%209 : memref<!tpu.dma_semaphore, #tpu.memory_space<semaphore_mem>>) src(%205 : memref<1x128xf32, #tpu.memory_space<any>>) dst(%207 : memref<1x128xf32, #tpu.memory_space<vmem>>)
    %c2_i32_114 = arith.constant 2 : i32
    %c0_i32_115 = arith.constant 0 : i32
    %210 = arith.addi %c0_i32_115, %c2_i32_114 : i32
    %c8_i32_116 = arith.constant 8 : i32
    %c0_i32_117 = arith.constant 0 : i32
    %211 = arith.cmpi eq, %c8_i32_116, %c0_i32_117 : i32
    %c1_i32_118 = arith.constant 1 : i32
    %212 = arith.select %211, %c1_i32_118, %c8_i32_116 : i32
    %213 = arith.remsi %210, %212 : i32
    %c0_i32_119 = arith.constant 0 : i32
    %214 = arith.cmpi ne, %213, %c0_i32_119 : i32
    %c0_i32_120 = arith.constant 0 : i32
    %215 = arith.cmpi slt, %213, %c0_i32_120 : i32
    %c0_i32_121 = arith.constant 0 : i32
    %216 = arith.cmpi slt, %212, %c0_i32_121 : i32
    %217 = arith.xori %215, %216 : i1
    %218 = arith.andi %217, %214 : i1
    %219 = arith.addi %213, %212 : i32
    %220 = arith.select %218, %219, %213 : i32
    %c0_i32_122 = arith.constant 0 : i32
    %c0_i32_123 = arith.constant 0 : i32
    %c0_i32_124 = arith.constant 0 : i32
    %221 = tpu.memref_slice %arg2[%arg0, %c0_i32_123, %c0_i32_124] : memref<2x16x128xf32, #tpu.memory_space<any>> -> memref<1x1x128xf32, #tpu.memory_space<any>>
    %222 = tpu.memref_squeeze %221 : memref<1x1x128xf32, #tpu.memory_space<any>> -> memref<1x128xf32, #tpu.memory_space<any>>
    %c0_i32_125 = arith.constant 0 : i32
    %c0_i32_126 = arith.constant 0 : i32
    %223 = tpu.memref_slice %arg3[%c0_i32_122, %c0_i32_125, %c0_i32_126] : memref<1x8x128xf32, #tpu.memory_space<vmem>> -> memref<1x1x128xf32, #tpu.memory_space<vmem>>
    %224 = tpu.memref_squeeze %223 : memref<1x1x128xf32, #tpu.memory_space<vmem>> -> memref<1x128xf32, #tpu.memory_space<vmem>>
    %225 = tpu.memref_slice %arg4[%220] : memref<8x!tpu.dma_semaphore, #tpu.memory_space<semaphore_mem>> -> memref<1x!tpu.dma_semaphore, #tpu.memory_space<semaphore_mem>>
    %226 = tpu.memref_squeeze %225 : memref<1x!tpu.dma_semaphore, #tpu.memory_space<semaphore_mem>> -> memref<!tpu.dma_semaphore, #tpu.memory_space<semaphore_mem>>
    tpu.wait_dma2 semaphore(%226 : memref<!tpu.dma_semaphore, #tpu.memory_space<semaphore_mem>>) src(%222 : memref<1x128xf32, #tpu.memory_space<any>>) dst(%224 : memref<1x128xf32, #tpu.memory_space<vmem>>)
    %c3_i32_127 = arith.constant 3 : i32
    %c0_i32_128 = arith.constant 0 : i32
    %227 = arith.addi %c0_i32_128, %c3_i32_127 : i32
    %c8_i32_129 = arith.constant 8 : i32
    %c0_i32_130 = arith.constant 0 : i32
    %228 = arith.cmpi eq, %c8_i32_129, %c0_i32_130 : i32
    %c1_i32_131 = arith.constant 1 : i32
    %229 = arith.select %228, %c1_i32_131, %c8_i32_129 : i32
    %230 = arith.remsi %227, %229 : i32
    %c0_i32_132 = arith.constant 0 : i32
    %231 = arith.cmpi ne, %230, %c0_i32_132 : i32
    %c0_i32_133 = arith.constant 0 : i32
    %232 = arith.cmpi slt, %230, %c0_i32_133 : i32
    %c0_i32_134 = arith.constant 0 : i32
    %233 = arith.cmpi slt, %229, %c0_i32_134 : i32
    %234 = arith.xori %232, %233 : i1
    %235 = arith.andi %234, %231 : i1
    %236 = arith.addi %230, %229 : i32
    %237 = arith.select %235, %236, %230 : i32
    %c0_i32_135 = arith.constant 0 : i32
    %c0_i32_136 = arith.constant 0 : i32
    %c0_i32_137 = arith.constant 0 : i32
    %238 = tpu.memref_slice %arg2[%arg0, %c0_i32_136, %c0_i32_137] : memref<2x16x128xf32, #tpu.memory_space<any>> -> memref<1x1x128xf32, #tpu.memory_space<any>>
    %239 = tpu.memref_squeeze %238 : memref<1x1x128xf32, #tpu.memory_space<any>> -> memref<1x128xf32, #tpu.memory_space<any>>
    %c0_i32_138 = arith.constant 0 : i32
    %c0_i32_139 = arith.constant 0 : i32
    %240 = tpu.memref_slice %arg3[%c0_i32_135, %c0_i32_138, %c0_i32_139] : memref<1x8x128xf32, #tpu.memory_space<vmem>> -> memref<1x1x128xf32, #tpu.memory_space<vmem>>
    %241 = tpu.memref_squeeze %240 : memref<1x1x128xf32, #tpu.memory_space<vmem>> -> memref<1x128xf32, #tpu.memory_space<vmem>>
    %242 = tpu.memref_slice %arg4[%237] : memref<8x!tpu.dma_semaphore, #tpu.memory_space<semaphore_mem>> -> memref<1x!tpu.dma_semaphore, #tpu.memory_space<semaphore_mem>>
    %243 = tpu.memref_squeeze %242 : memref<1x!tpu.dma_semaphore, #tpu.memory_space<semaphore_mem>> -> memref<!tpu.dma_semaphore, #tpu.memory_space<semaphore_mem>>
    tpu.wait_dma2 semaphore(%243 : memref<!tpu.dma_semaphore, #tpu.memory_space<semaphore_mem>>) src(%239 : memref<1x128xf32, #tpu.memory_space<any>>) dst(%241 : memref<1x128xf32, #tpu.memory_space<vmem>>)
    %c4_i32_140 = arith.constant 4 : i32
    %c0_i32_141 = arith.constant 0 : i32
    %244 = arith.addi %c0_i32_141, %c4_i32_140 : i32
    %c8_i32_142 = arith.constant 8 : i32
    %c0_i32_143 = arith.constant 0 : i32
    %245 = arith.cmpi eq, %c8_i32_142, %c0_i32_143 : i32
    %c1_i32_144 = arith.constant 1 : i32
    %246 = arith.select %245, %c1_i32_144, %c8_i32_142 : i32
    %247 = arith.remsi %244, %246 : i32
    %c0_i32_145 = arith.constant 0 : i32
    %248 = arith.cmpi ne, %247, %c0_i32_145 : i32
    %c0_i32_146 = arith.constant 0 : i32
    %249 = arith.cmpi slt, %247, %c0_i32_146 : i32
    %c0_i32_147 = arith.constant 0 : i32
    %250 = arith.cmpi slt, %246, %c0_i32_147 : i32
    %251 = arith.xori %249, %250 : i1
    %252 = arith.andi %251, %248 : i1
    %253 = arith.addi %247, %246 : i32
    %254 = arith.select %252, %253, %247 : i32
    %c0_i32_148 = arith.constant 0 : i32
    %c0_i32_149 = arith.constant 0 : i32
    %c0_i32_150 = arith.constant 0 : i32
    %255 = tpu.memref_slice %arg2[%arg0, %c0_i32_149, %c0_i32_150] : memref<2x16x128xf32, #tpu.memory_space<any>> -> memref<1x1x128xf32, #tpu.memory_space<any>>
    %256 = tpu.memref_squeeze %255 : memref<1x1x128xf32, #tpu.memory_space<any>> -> memref<1x128xf32, #tpu.memory_space<any>>
    %c0_i32_151 = arith.constant 0 : i32
    %c0_i32_152 = arith.constant 0 : i32
    %257 = tpu.memref_slice %arg3[%c0_i32_148, %c0_i32_151, %c0_i32_152] : memref<1x8x128xf32, #tpu.memory_space<vmem>> -> memref<1x1x128xf32, #tpu.memory_space<vmem>>
    %258 = tpu.memref_squeeze %257 : memref<1x1x128xf32, #tpu.memory_space<vmem>> -> memref<1x128xf32, #tpu.memory_space<vmem>>
    %259 = tpu.memref_slice %arg4[%254] : memref<8x!tpu.dma_semaphore, #tpu.memory_space<semaphore_mem>> -> memref<1x!tpu.dma_semaphore, #tpu.memory_space<semaphore_mem>>
    %260 = tpu.memref_squeeze %259 : memref<1x!tpu.dma_semaphore, #tpu.memory_space<semaphore_mem>> -> memref<!tpu.dma_semaphore, #tpu.memory_space<semaphore_mem>>
    tpu.wait_dma2 semaphore(%260 : memref<!tpu.dma_semaphore, #tpu.memory_space<semaphore_mem>>) src(%256 : memref<1x128xf32, #tpu.memory_space<any>>) dst(%258 : memref<1x128xf32, #tpu.memory_space<vmem>>)
    %c5_i32_153 = arith.constant 5 : i32
    %c0_i32_154 = arith.constant 0 : i32
    %261 = arith.addi %c0_i32_154, %c5_i32_153 : i32
    %c8_i32_155 = arith.constant 8 : i32
    %c0_i32_156 = arith.constant 0 : i32
    %262 = arith.cmpi eq, %c8_i32_155, %c0_i32_156 : i32
    %c1_i32_157 = arith.constant 1 : i32
    %263 = arith.select %262, %c1_i32_157, %c8_i32_155 : i32
    %264 = arith.remsi %261, %263 : i32
    %c0_i32_158 = arith.constant 0 : i32
    %265 = arith.cmpi ne, %264, %c0_i32_158 : i32
    %c0_i32_159 = arith.constant 0 : i32
    %266 = arith.cmpi slt, %264, %c0_i32_159 : i32
    %c0_i32_160 = arith.constant 0 : i32
    %267 = arith.cmpi slt, %263, %c0_i32_160 : i32
    %268 = arith.xori %266, %267 : i1
    %269 = arith.andi %268, %265 : i1
    %270 = arith.addi %264, %263 : i32
    %271 = arith.select %269, %270, %264 : i32
    %c0_i32_161 = arith.constant 0 : i32
    %c0_i32_162 = arith.constant 0 : i32
    %c0_i32_163 = arith.constant 0 : i32
    %272 = tpu.memref_slice %arg2[%arg0, %c0_i32_162, %c0_i32_163] : memref<2x16x128xf32, #tpu.memory_space<any>> -> memref<1x1x128xf32, #tpu.memory_space<any>>
    %273 = tpu.memref_squeeze %272 : memref<1x1x128xf32, #tpu.memory_space<any>> -> memref<1x128xf32, #tpu.memory_space<any>>
    %c0_i32_164 = arith.constant 0 : i32
    %c0_i32_165 = arith.constant 0 : i32
    %274 = tpu.memref_slice %arg3[%c0_i32_161, %c0_i32_164, %c0_i32_165] : memref<1x8x128xf32, #tpu.memory_space<vmem>> -> memref<1x1x128xf32, #tpu.memory_space<vmem>>
    %275 = tpu.memref_squeeze %274 : memref<1x1x128xf32, #tpu.memory_space<vmem>> -> memref<1x128xf32, #tpu.memory_space<vmem>>
    %276 = tpu.memref_slice %arg4[%271] : memref<8x!tpu.dma_semaphore, #tpu.memory_space<semaphore_mem>> -> memref<1x!tpu.dma_semaphore, #tpu.memory_space<semaphore_mem>>
    %277 = tpu.memref_squeeze %276 : memref<1x!tpu.dma_semaphore, #tpu.memory_space<semaphore_mem>> -> memref<!tpu.dma_semaphore, #tpu.memory_space<semaphore_mem>>
    tpu.wait_dma2 semaphore(%277 : memref<!tpu.dma_semaphore, #tpu.memory_space<semaphore_mem>>) src(%273 : memref<1x128xf32, #tpu.memory_space<any>>) dst(%275 : memref<1x128xf32, #tpu.memory_space<vmem>>)
    %c6_i32_166 = arith.constant 6 : i32
    %c0_i32_167 = arith.constant 0 : i32
    %278 = arith.addi %c0_i32_167, %c6_i32_166 : i32
    %c8_i32_168 = arith.constant 8 : i32
    %c0_i32_169 = arith.constant 0 : i32
    %279 = arith.cmpi eq, %c8_i32_168, %c0_i32_169 : i32
    %c1_i32_170 = arith.constant 1 : i32
    %280 = arith.select %279, %c1_i32_170, %c8_i32_168 : i32
    %281 = arith.remsi %278, %280 : i32
    %c0_i32_171 = arith.constant 0 : i32
    %282 = arith.cmpi ne, %281, %c0_i32_171 : i32
    %c0_i32_172 = arith.constant 0 : i32
    %283 = arith.cmpi slt, %281, %c0_i32_172 : i32
    %c0_i32_173 = arith.constant 0 : i32
    %284 = arith.cmpi slt, %280, %c0_i32_173 : i32
    %285 = arith.xori %283, %284 : i1
    %286 = arith.andi %285, %282 : i1
    %287 = arith.addi %281, %280 : i32
    %288 = arith.select %286, %287, %281 : i32
    %c0_i32_174 = arith.constant 0 : i32
    %c0_i32_175 = arith.constant 0 : i32
    %c0_i32_176 = arith.constant 0 : i32
    %289 = tpu.memref_slice %arg2[%arg0, %c0_i32_175, %c0_i32_176] : memref<2x16x128xf32, #tpu.memory_space<any>> -> memref<1x1x128xf32, #tpu.memory_space<any>>
    %290 = tpu.memref_squeeze %289 : memref<1x1x128xf32, #tpu.memory_space<any>> -> memref<1x128xf32, #tpu.memory_space<any>>
    %c0_i32_177 = arith.constant 0 : i32
    %c0_i32_178 = arith.constant 0 : i32
    %291 = tpu.memref_slice %arg3[%c0_i32_174, %c0_i32_177, %c0_i32_178] : memref<1x8x128xf32, #tpu.memory_space<vmem>> -> memref<1x1x128xf32, #tpu.memory_space<vmem>>
    %292 = tpu.memref_squeeze %291 : memref<1x1x128xf32, #tpu.memory_space<vmem>> -> memref<1x128xf32, #tpu.memory_space<vmem>>
    %293 = tpu.memref_slice %arg4[%288] : memref<8x!tpu.dma_semaphore, #tpu.memory_space<semaphore_mem>> -> memref<1x!tpu.dma_semaphore, #tpu.memory_space<semaphore_mem>>
    %294 = tpu.memref_squeeze %293 : memref<1x!tpu.dma_semaphore, #tpu.memory_space<semaphore_mem>> -> memref<!tpu.dma_semaphore, #tpu.memory_space<semaphore_mem>>
    tpu.wait_dma2 semaphore(%294 : memref<!tpu.dma_semaphore, #tpu.memory_space<semaphore_mem>>) src(%290 : memref<1x128xf32, #tpu.memory_space<any>>) dst(%292 : memref<1x128xf32, #tpu.memory_space<vmem>>)
    %c7_i32_179 = arith.constant 7 : i32
    %c0_i32_180 = arith.constant 0 : i32
    %295 = arith.addi %c0_i32_180, %c7_i32_179 : i32
    %c8_i32_181 = arith.constant 8 : i32
    %c0_i32_182 = arith.constant 0 : i32
    %296 = arith.cmpi eq, %c8_i32_181, %c0_i32_182 : i32
    %c1_i32_183 = arith.constant 1 : i32
    %297 = arith.select %296, %c1_i32_183, %c8_i32_181 : i32
    %298 = arith.remsi %295, %297 : i32
    %c0_i32_184 = arith.constant 0 : i32
    %299 = arith.cmpi ne, %298, %c0_i32_184 : i32
    %c0_i32_185 = arith.constant 0 : i32
    %300 = arith.cmpi slt, %298, %c0_i32_185 : i32
    %c0_i32_186 = arith.constant 0 : i32
    %301 = arith.cmpi slt, %297, %c0_i32_186 : i32
    %302 = arith.xori %300, %301 : i1
    %303 = arith.andi %302, %299 : i1
    %304 = arith.addi %298, %297 : i32
    %305 = arith.select %303, %304, %298 : i32
    %c0_i32_187 = arith.constant 0 : i32
    %c0_i32_188 = arith.constant 0 : i32
    %c0_i32_189 = arith.constant 0 : i32
    %306 = tpu.memref_slice %arg2[%arg0, %c0_i32_188, %c0_i32_189] : memref<2x16x128xf32, #tpu.memory_space<any>> -> memref<1x1x128xf32, #tpu.memory_space<any>>
    %307 = tpu.memref_squeeze %306 : memref<1x1x128xf32, #tpu.memory_space<any>> -> memref<1x128xf32, #tpu.memory_space<any>>
    %c0_i32_190 = arith.constant 0 : i32
    %c0_i32_191 = arith.constant 0 : i32
    %308 = tpu.memref_slice %arg3[%c0_i32_187, %c0_i32_190, %c0_i32_191] : memref<1x8x128xf32, #tpu.memory_space<vmem>> -> memref<1x1x128xf32, #tpu.memory_space<vmem>>
    %309 = tpu.memref_squeeze %308 : memref<1x1x128xf32, #tpu.memory_space<vmem>> -> memref<1x128xf32, #tpu.memory_space<vmem>>
    %310 = tpu.memref_slice %arg4[%305] : memref<8x!tpu.dma_semaphore, #tpu.memory_space<semaphore_mem>> -> memref<1x!tpu.dma_semaphore, #tpu.memory_space<semaphore_mem>>
    %311 = tpu.memref_squeeze %310 : memref<1x!tpu.dma_semaphore, #tpu.memory_space<semaphore_mem>> -> memref<!tpu.dma_semaphore, #tpu.memory_space<semaphore_mem>>
    tpu.wait_dma2 semaphore(%311 : memref<!tpu.dma_semaphore, #tpu.memory_space<semaphore_mem>>) src(%307 : memref<1x128xf32, #tpu.memory_space<any>>) dst(%309 : memref<1x128xf32, #tpu.memory_space<vmem>>)
    %c8_i32_192 = arith.constant 8 : i32
    return
  }
  func.func @transform_1(%arg0: i32, %arg1: memref<2x8xi32, #tpu.memory_space<smem>>) -> (i32, i32, i32) {
    %c0_i32 = arith.constant 0 : i32
    %c0_i32_0 = arith.constant 0 : i32
    %c0_i32_1 = arith.constant 0 : i32
    return %arg0, %c0_i32, %c0_i32_0 : i32, i32, i32
  }
}

</mosaic_0001>

<bundles_post_ra>
// kernel: tpu_custom_call.1
= control target key start
LH: loop header
LB: loop body
LE: loop exit
PB: predicated region body
PF: predicated region fallthrough
CT: control target
= control target key end

     0   :  { %s757_s9 = smov [#allocation4]   ;;  %s1148_s0 = inlined_call_operand.hbm [shape: s32[2,8], index: 0, kind: input, shape index: {}]   ;;  %s1149_s1 = inlined_call_operand.hbm [shape: f32[2,16,128], index: 1, kind: input, shape index: {}]   ;;  %s1150_s2 = inlined_call_operand.hbm [shape: f32[2,8,128], index: 2, kind: output, shape index: {}]  }
   0x1   :  { %8 = dma.hbm_to_smem %s1148_s0, 32, %s757_s9, [#allocation3] }
   0x2   :  { %707 = dma.done.wait [#allocation3], 32 }
   0x3   :  { %708 = vsyncadd [#allocation3], 4294967264 }
   0x4   :  { %10 = sfence }
   0x5   :  { %11 = vsyncpa [#allocation6], 0 }
   0x6   :  { %13 = vsyncpa [#allocation6 + $0x1], 0  ;;  %s777_s12 = smov 0   ;;  %s779_s13 = smov 0  }
   0x7   :  { %s781_s14 = smov 0  }
   0x8 LB: > { %s356_s0 = sadd.s32 4294967295, %s755_s14   ;;  %s794_s15 = sadd.s32 1, %s755_s14   ;;  %s755_s14 = sphi %s781_s14, %s1168_s14   ;;  %s751_s13 = sphi %s779_s13, %s1171_s13   ;;  %s747_s12 = sphi %s777_s12, %s1170_s12  }
   0x9   : > { %1156 = sst [smem:[#allocation43_spill]] %s794_s15  ;;  %s22_s16 = ssub.s32 %s755_s14, %s794_s15 }
   0xa   : > { %s25_s17 = sadd.s32 1, %s751_s13  ;;  %p23_p0 = scmp.eq.s32.totalorder %s22_s16, 0 }
   0xb   : > { %p357_p1 = scmp.ne.s32.totalorder %s22_s16, 0  ;;  %p29_p2 = scmp.eq.s32.totalorder %s755_s14, 1 }
   0xc   : > { %p34_p3 = scmp.ne.s32.totalorder %s751_s13, %s747_s12  ;;  %p35_p5 = scmp.eq.s32.totalorder %s356_s0, 1 }
   0xd   : > { %s803_s18 = scalar_select %p23_p0, %s751_s13, %s25_s17  }
   0xe   : > { %p805_p4 = por %p357_p1, %p29_p2  ;;  %p424_p6 = scmp.lt.s32.totalorder %s755_s14, 2 }
   0xf   : > { %1157 = sst [smem:[#allocation44_spill]] %s803_s18  ;;  %p810_p7 = por %p35_p5, %p34_p3 }
  0x10   : > { %s1151_s21 = sand.u32 1, %s751_s13   ;;  %s818_s23 = sshll.u32 %s755_s14, 7 }
  0x11   : > { %s1159_s20 = scalar_select %p810_p7, 1, 0 }
  0x12   : > { %s359_s22 = sshll.u32 %s1151_s21, 3  ;;  %s69_s26 = sadd.s32 1, %s818_s23 }
  0x13   : > { %1160 = sst [smem:[#allocation45_spill]] %s1159_s20  ;;  %s826_s28 = scalar_lea.vmem [#allocation5], %s359_s22 }
  0x14   : > { %s385_s24 = scalar_select %p424_p6, [#allocation4], [#allocation25] }
  0x15   : > { %s386_s25 = scalar_select %p424_p6, %s818_s23, 0 }
  0x16   : > { %s65_s29 = sshll.u32 %s826_s28, 4  ;;  %s1173_s26 = smov (!%p424_p6, %s69_s26), 0  ;;  %s839_s29 = int_to_ptr.vmem [resolvable:$true] %s65_s29 }
  0x17   : > { %s53_s27 = sld [smem:[%s385_s24 + %s386_s25]]  ;;  %s834_s3 = sshll.u32 %s755_s14, 4 }
  0x18   : > { %s388_s30 = scalar_select %p424_p6, [#allocation4], [#allocation26] }
  0x19   : > { %s74_s4 = scalar_lea.vmem %s826_s28, 1 [#allocation5]  ;;  %s92_s7 = scalar_lea.vmem %s826_s28, 2 [#allocation5] }
  0x1a   : > { %s837_s5 = sld [smem:[%s388_s30 + %s1173_s26]]  ;;  %s83_s6 = sshll.u32 %s74_s4, 4  ;;  %s844_s6 = int_to_ptr.vmem [resolvable:$true] %s83_s6 }
  0x1b   : > { %s849_s17 = sshll.u32 %s92_s7, 4  ;;  %s856_s26 = scalar_lea.hbm %s1149_s1, 512  ;;  %s102_s17 = int_to_ptr.vmem [resolvable:$true] %s849_s17 }
  0x1d   : > { %s55_s8 = sadd.s32 %s834_s3, %s53_s27 }
  0x1e   : > { %s362_s10 = sshll.u32 %s55_s8, 4 }
  0x1f   : > { %s57_s16 = scalar_lea.hbm %s1149_s1, %s362_s10 }
  0x20   : > { %s459_s22 = scalar_lea.hbm %s57_s16, 16  ;;  %p464_p11 = scmp.lt.s32.totalorder %s57_s16, %s1149_s1 }
  0x21   : > { %p460_p8 = scmp.ne.s32.totalorder %s57_s16, %s459_s22  ;;  %p465_p12 = scmp.lt.s32.totalorder %s856_s26, %s459_s22 }
  0x23   : > { %p461_p9 = pnand %p460_p8, %p424_p6  ;;  %p466_p13 = por %p465_p12, %p464_p11 }
  0x25   : > { %p462_p10 = pneg %p461_p9 }
  0x27   : > { %p467_p0 = pnand %p466_p13, %p462_p10 }
  0x29   : > { %470 = shalt.err (!%p467_p0)  }
  0x2a   : > { %s471_s4 = scalar_lea.vmem %s839_s29, 16  ;;  %s758_s7 = smov [#allocation5]  }
  0x2b   : > { %p472_p1 = scmp.ne.s32.totalorder %s839_s29, %s471_s4  ;;  %s475_s8 = sshll.u32 %s758_s7, 4  ;;  %s866_s8 = int_to_ptr.vmem [resolvable:$false] %s475_s8 }
  0x2c   : > { %s869_s10 = scalar_lea.vmem %s866_s8, 256  ;;  %p1152_p5 = scmp.lt.s32.totalorder %s839_s29, %s866_s8 }
  0x2d   : > { %p473_p2 = pnand %p472_p1, %p424_p6  ;;  %p479_p8 = scmp.lt.s32.totalorder %s869_s10, %s471_s4 }
  0x2f   : > { %p474_p3 = pneg %p473_p2  ;;  %p480_p9 = por %p479_p8, %p1152_p5 }
  0x31   : > { %p481_p10 = pnand %p480_p9, %p474_p3 }
  0x33   : > { %484 = shalt.err (!%p481_p10)  }
  0x34   : > { %387 = dma.hbm_to_vmem [thread:$0]  (%p424_p6), %s57_s16, 16, %s839_s29, [#allocation2] }
  0x35   : > { %s71_s11 = sadd.s32 %s834_s3, %s837_s5  ;;  %s110_s0 = scalar_lea.vmem %s826_s28, 3 [#allocation5] }
  0x36   : > { %s363_s22 = sshll.u32 %s71_s11, 4  ;;  %s105_s24 = sadd.s32 3, %s818_s23 }
  0x37   : > { %s73_s30 = scalar_lea.hbm %s1149_s1, %s363_s22  ;;  %s887_s4 = sshll.u32 %s110_s0, 4  ;;  %s925_s4 = int_to_ptr.vmem [resolvable:$true] %s887_s4 }
  0x38   : > { %s485_s7 = scalar_lea.hbm %s73_s30, 16  ;;  %p490_p0 = scmp.lt.s32.totalorder %s73_s30, %s1149_s1 }
  0x39   : > { %p486_p11 = scmp.ne.s32.totalorder %s73_s30, %s485_s7  ;;  %p491_p1 = scmp.lt.s32.totalorder %s856_s26, %s485_s7 }
  0x3b   : > { %p487_p12 = pnand %p486_p11, %p424_p6  ;;  %p492_p2 = por %p491_p1, %p490_p0 }
  0x3d   : > { %p488_p13 = pneg %p487_p12 }
  0x3f   : > { %p493_p3 = pnand %p492_p2, %p488_p13 }
  0x41   : > { %496 = shalt.err (!%p493_p3)  }
  0x42   : > { %s497_s5 = scalar_lea.vmem %s844_s6, 16  ;;  %p504_p11 = scmp.lt.s32.totalorder %s844_s6, %s866_s8 }
  0x43   : > { %p498_p8 = scmp.ne.s32.totalorder %s844_s6, %s497_s5  ;;  %p505_p12 = scmp.lt.s32.totalorder %s869_s10, %s497_s5 }
  0x45   : > { %p499_p9 = pnand %p498_p8, %p424_p6  ;;  %p506_p5 = por %p505_p12, %p504_p11 }
  0x47   : > { %p500_p10 = pneg %p499_p9 }
  0x49   : > { %p507_p7 = pnand %p506_p5, %p500_p10 }
  0x4b   : > { %510 = shalt.err (!%p507_p7)  }
  0x4c   : > { %390 = dma.hbm_to_vmem [thread:$0]  (%p424_p6), %s73_s30, 16, %s844_s6, [#allocation2 + $0x1] }
  0x4d   : > { %s391_s21 = scalar_select %p424_p6, [#allocation4], [#allocation27] }
  0x4e   : > { %s1161_s9 = sadd.s32 2, %s818_s23  ;;  %s123_s0 = sadd.s32 4, %s818_s23 }
  0x4f   : > { %s1175_s9 = smov (!%p424_p6, %s1161_s9), 0  ;;  %s1177_s24 = smov (!%p424_p6, %s105_s24), 0 }
  0x50   : > { %s394_s16 = scalar_select %p424_p6, [#allocation4], [#allocation28] }
  0x51   : > { %s88_s11 = sld [smem:[%s391_s21 + %s1175_s9]]  ;;  %s128_s27 = scalar_lea.vmem %s826_s28, 4 [#allocation5] }
  0x52   : > { %s397_s22 = scalar_select %p424_p6, [#allocation4], [#allocation29] }
  0x53   : > { %s918_s25 = sld [smem:[%s394_s16 + %s1177_s24]]  ;;  %s1179_s0 = smov (!%p424_p6, %s123_s0), 0 }
  0x54   : > { %s928_s30 = sld [smem:[%s397_s22 + %s1179_s0]]  ;;  %s137_s5 = sshll.u32 %s128_s27, 4  ;;  %s948_s5 = int_to_ptr.vmem [resolvable:$true] %s137_s5 }
  0x55   : > { %s141_s15 = sadd.s32 5, %s818_s23 }
  0x57   : > { %s89_s6 = sadd.s32 %s834_s3, %s88_s11 }
  0x58   : > { %s364_s7 = sshll.u32 %s89_s6, 4 }
  0x59   : > { %s91_s18 = scalar_lea.hbm %s1149_s1, %s364_s7 }
  0x5a   : > { %s511_s20 = scalar_lea.hbm %s91_s18, 16  ;;  %p516_p0 = scmp.lt.s32.totalorder %s91_s18, %s1149_s1 }
  0x5b   : > { %p512_p7 = scmp.ne.s32.totalorder %s91_s18, %s511_s20  ;;  %p517_p1 = scmp.lt.s32.totalorder %s856_s26, %s511_s20 }
  0x5d   : > { %p513_p5 = pnand %p512_p7, %p424_p6  ;;  %p518_p2 = por %p517_p1, %p516_p0 }
  0x5f   : > { %p514_p13 = pneg %p513_p5 }
  0x61   : > { %p519_p3 = pnand %p518_p2, %p514_p13 }
  0x63   : > { %522 = shalt.err (!%p519_p3)  }
  0x64   : > { %s523_s11 = scalar_lea.vmem %s102_s17, 16  ;;  %p530_p11 = scmp.lt.s32.totalorder %s102_s17, %s866_s8 }
  0x65   : > { %p524_p8 = scmp.ne.s32.totalorder %s102_s17, %s523_s11  ;;  %p531_p12 = scmp.lt.s32.totalorder %s869_s10, %s523_s11 }
  0x67   : > { %p525_p9 = pnand %p524_p8, %p424_p6  ;;  %p532_p7 = por %p531_p12, %p530_p11 }
  0x69   : > { %p526_p10 = pneg %p525_p9 }
  0x6b   : > { %p533_p5 = pnand %p532_p7, %p526_p10 }
  0x6d   : > { %536 = shalt.err (!%p533_p5)  }
  0x6e   : > { %393 = dma.hbm_to_vmem [thread:$0]  (%p424_p6), %s91_s18, 16, %s102_s17, [#allocation2 + $0x2] }
  0x6f   : > { %s107_s20 = sadd.s32 %s834_s3, %s918_s25  ;;  %s146_s22 = scalar_lea.vmem %s826_s28, 5 [#allocation5] }
  0x70   : > { %s365_s0 = sshll.u32 %s107_s20, 4  ;;  %s125_s21 = sadd.s32 %s834_s3, %s928_s30 }
  0x71   : > { %s109_s7 = scalar_lea.hbm %s1149_s1, %s365_s0 }
  0x72   : > { %s537_s9 = scalar_lea.hbm %s109_s7, 16  ;;  %p542_p2 = scmp.lt.s32.totalorder %s109_s7, %s1149_s1 }
  0x73   : > { %p538_p13 = scmp.ne.s32.totalorder %s109_s7, %s537_s9  ;;  %p543_p3 = scmp.lt.s32.totalorder %s856_s26, %s537_s9 }
  0x75   : > { %p539_p0 = pnand %p538_p13, %p424_p6  ;;  %p544_p8 = por %p543_p3, %p542_p2 }
  0x77   : > { %p540_p1 = pneg %p539_p0 }
  0x79   : > { %p545_p9 = pnand %p544_p8, %p540_p1 }
  0x7b   : > { %548 = shalt.err (!%p545_p9)  }
  0x7c   : > { %s549_s18 = scalar_lea.vmem %s925_s4, 16  ;;  %p556_p7 = scmp.lt.s32.totalorder %s925_s4, %s866_s8 }
  0x7d   : > { %p550_p10 = scmp.ne.s32.totalorder %s925_s4, %s549_s18  ;;  %p557_p5 = scmp.lt.s32.totalorder %s869_s10, %s549_s18 }
  0x7f   : > { %p551_p11 = pnand %p550_p10, %p424_p6  ;;  %p558_p13 = por %p557_p5, %p556_p7 }
  0x81   : > { %p552_p12 = pneg %p551_p11 }
  0x83   : > { %p559_p0 = pnand %p558_p13, %p552_p12 }
  0x85   : > { %562 = shalt.err (!%p559_p0)  }
  0x86   : > { %396 = dma.hbm_to_vmem [thread:$0]  (%p424_p6), %s109_s7, 16, %s925_s4, [#allocation2 + $0x3] }
  0x87   : > { %s366_s17 = sshll.u32 %s125_s21, 4  ;;  %s155_s25 = sshll.u32 %s146_s22, 4  ;;  %s1002_s25 = int_to_ptr.vmem [resolvable:$true] %s155_s25 }
  0x88   : > { %s127_s20 = scalar_lea.hbm %s1149_s1, %s366_s17  ;;  %s159_s0 = sadd.s32 6, %s818_s23 }
  0x89   : > { %s563_s27 = scalar_lea.hbm %s127_s20, 16  ;;  %p568_p8 = scmp.lt.s32.totalorder %s127_s20, %s1149_s1 }
  0x8a   : > { %p564_p1 = scmp.ne.s32.totalorder %s127_s20, %s563_s27  ;;  %p569_p9 = scmp.lt.s32.totalorder %s856_s26, %s563_s27 }
  0x8c   : > { %p565_p2 = pnand %p564_p1, %p424_p6  ;;  %p570_p10 = por %p569_p9, %p568_p8 }
  0x8e   : > { %p566_p3 = pneg %p565_p2 }
  0x90   : > { %p571_p11 = pnand %p570_p10, %p566_p3 }
  0x92   : > { %574 = shalt.err (!%p571_p11)  }
  0x93   : > { %s575_s4 = scalar_lea.vmem %s948_s5, 16  ;;  %p582_p13 = scmp.lt.s32.totalorder %s948_s5, %s866_s8 }
  0x94   : > { %p576_p12 = scmp.ne.s32.totalorder %s948_s5, %s575_s4  ;;  %p583_p0 = scmp.lt.s32.totalorder %s869_s10, %s575_s4 }
  0x96   : > { %p577_p7 = pnand %p576_p12, %p424_p6  ;;  %p584_p1 = por %p583_p0, %p582_p13 }
  0x98   : > { %p578_p5 = pneg %p577_p7 }
  0x9a   : > { %p585_p2 = pnand %p584_p1, %p578_p5 }
  0x9c   : > { %588 = shalt.err (!%p585_p2)  }
  0x9d   : > { %399 = dma.hbm_to_vmem [thread:$0]  (%p424_p6), %s127_s20, 16, %s948_s5, [#allocation2 + $0x4] }
  0x9e   : > { %s400_s22 = scalar_select %p424_p6, [#allocation4], [#allocation30] }
  0x9f   : > { %s1181_s15 = smov (!%p424_p6, %s141_s15), 0  ;;  %s1183_s0 = smov (!%p424_p6, %s159_s0), 0 }
  0xa0   : > { %s403_s7 = scalar_select %p424_p6, [#allocation4], [#allocation31] }
  0xa1   : > { %s142_s21 = sld [smem:[%s400_s22 + %s1181_s15]]  ;;  %s177_s24 = sadd.s32 7, %s818_s23 }
  0xa2   : > { %s1005_s16 = sld [smem:[%s403_s7 + %s1183_s0]]  ;;  %s164_s18 = scalar_lea.vmem %s826_s28, 6 [#allocation5] }
  0xa3   : > { %s406_s5 = scalar_select %p424_p6, [#allocation4], [#allocation32] }
  0xa4   : > { %s1185_s24 = smov (!%p424_p6, %s177_s24), 0  ;;  %s173_s30 = sshll.u32 %s164_s18, 4  ;;  %s174_s30 = int_to_ptr.vmem [resolvable:$true] %s173_s30 }
  0xa5   : > { %s1013_s20 = sld [smem:[%s406_s5 + %s1185_s24]]  ;;  %s182_s9 = scalar_lea.vmem %s826_s28, 7 [#allocation5] }
  0xa7   : > { %s143_s17 = sadd.s32 %s834_s3, %s142_s21 }
  0xa8   : > { %s367_s11 = sshll.u32 %s143_s17, 4 }
  0xa9   : > { %s145_s6 = scalar_lea.hbm %s1149_s1, %s367_s11 }
  0xaa   : > { %s589_s4 = scalar_lea.hbm %s145_s6, 16  ;;  %p594_p10 = scmp.lt.s32.totalorder %s145_s6, %s1149_s1 }
  0xab   : > { %p590_p3 = scmp.ne.s32.totalorder %s145_s6, %s589_s4  ;;  %p595_p11 = scmp.lt.s32.totalorder %s856_s26, %s589_s4 }
  0xad   : > { %p591_p8 = pnand %p590_p3, %p424_p6  ;;  %p596_p12 = por %p595_p11, %p594_p10 }
  0xaf   : > { %p592_p9 = pneg %p591_p8 }
  0xb1   : > { %p597_p7 = pnand %p596_p12, %p592_p9 }
  0xb3   : > { %600 = shalt.err (!%p597_p7)  }
  0xb4   : > { %s601_s28 = scalar_lea.vmem %s1002_s25, 16  ;;  %p608_p1 = scmp.lt.s32.totalorder %s1002_s25, %s866_s8 }
  0xb5   : > { %p602_p5 = scmp.ne.s32.totalorder %s1002_s25, %s601_s28  ;;  %p609_p2 = scmp.lt.s32.totalorder %s869_s10, %s601_s28 }
  0xb7   : > { %p603_p13 = pnand %p602_p5, %p424_p6  ;;  %p610_p3 = por %p609_p2, %p608_p1 }
  0xb9   : > { %p604_p0 = pneg %p603_p13 }
  0xbb   : > { %p611_p8 = pnand %p610_p3, %p604_p0 }
  0xbd   : > { %614 = shalt.err (!%p611_p8)  }
  0xbe   : > { %402 = dma.hbm_to_vmem [thread:$0]  (%p424_p6), %s145_s6, 16, %s1002_s25, [#allocation2 + $0x5] }
  0xbf   : > { %s161_s7 = sadd.s32 %s834_s3, %s1005_s16  ;;  %s191_s24 = sshll.u32 %s182_s9, 4  ;;  %s192_s24 = int_to_ptr.vmem [resolvable:$true] %s191_s24 }
  0xc0   : > { %s368_s21 = sshll.u32 %s161_s7, 4 }
  0xc1   : > { %s163_s17 = scalar_lea.hbm %s1149_s1, %s368_s21 }
  0xc2   : > { %s615_s11 = scalar_lea.hbm %s163_s17, 16  ;;  %p620_p12 = scmp.lt.s32.totalorder %s163_s17, %s1149_s1 }
  0xc3   : > { %p616_p9 = scmp.ne.s32.totalorder %s163_s17, %s615_s11  ;;  %p621_p7 = scmp.lt.s32.totalorder %s856_s26, %s615_s11 }
  0xc5   : > { %p617_p10 = pnand %p616_p9, %p424_p6  ;;  %p622_p5 = por %p621_p7, %p620_p12 }
  0xc7   : > { %p618_p11 = pneg %p617_p10 }
  0xc9   : > { %p623_p13 = pnand %p622_p5, %p618_p11 }
  0xcb   : > { %626 = shalt.err (!%p623_p13)  }
  0xcc   : > { %s627_s25 = scalar_lea.vmem %s174_s30, 16  ;;  %p634_p3 = scmp.lt.s32.totalorder %s174_s30, %s866_s8 }
  0xcd   : > { %p628_p0 = scmp.ne.s32.totalorder %s174_s30, %s627_s25  ;;  %p635_p8 = scmp.lt.s32.totalorder %s869_s10, %s627_s25 }
  0xcf   : > { %p629_p1 = pnand %p628_p0, %p424_p6  ;;  %p636_p9 = por %p635_p8, %p634_p3 }
  0xd1   : > { %p630_p2 = pneg %p629_p1 }
  0xd3   : > { %p637_p10 = pnand %p636_p9, %p630_p2 }
  0xd5   : > { %640 = shalt.err (!%p637_p10)  }
  0xd6   : > { %405 = dma.hbm_to_vmem [thread:$0]  (%p424_p6), %s163_s17, 16, %s174_s30, [#allocation2 + $0x6] }
  0xd7   : > { %s179_s16 = sadd.s32 %s834_s3, %s1013_s20 }
  0xd8   : > { %s369_s6 = sshll.u32 %s179_s16, 4 }
  0xd9   : > { %s181_s0 = scalar_lea.hbm %s1149_s1, %s369_s6 }
  0xda   : > { %s641_s22 = scalar_lea.hbm %s181_s0, 16  ;;  %p646_p5 = scmp.lt.s32.totalorder %s181_s0, %s1149_s1 }
  0xdb   : > { %p642_p11 = scmp.ne.s32.totalorder %s181_s0, %s641_s22  ;;  %p647_p13 = scmp.lt.s32.totalorder %s856_s26, %s641_s22 }
  0xdd   : > { %p643_p12 = pnand %p642_p11, %p424_p6  ;;  %p648_p0 = por %p647_p13, %p646_p5 }
  0xdf   : > { %p644_p7 = pneg %p643_p12 }
  0xe1   : > { %p649_p1 = pnand %p648_p0, %p644_p7 }
  0xe3   : > { %652 = shalt.err (!%p649_p1)  }
  0xe4   : > { %s653_s3 = scalar_lea.vmem %s192_s24, 16  ;;  %p660_p9 = scmp.lt.s32.totalorder %s192_s24, %s866_s8 }
  0xe5   : > { %p654_p2 = scmp.ne.s32.totalorder %s192_s24, %s653_s3  ;;  %p661_p10 = scmp.lt.s32.totalorder %s869_s10, %s653_s3 }
  0xe7   : > { %p655_p3 = pnand %p654_p2, %p424_p6  ;;  %p662_p11 = por %p661_p10, %p660_p9 }
  0xe9   : > { %p656_p8 = pneg %p655_p3 }
  0xeb   : > { %p663_p12 = pnand %p662_p11, %p656_p8 }
  0xed   : > { %666 = shalt.err (!%p663_p12)  }
  0xee   : > { %408 = dma.hbm_to_vmem [thread:$0]  (%p424_p6), %s181_s0, 16, %s192_s24, [#allocation2 + $0x7] }
  0xef   : > { %710 = dma.done.wait (%p424_p6), [#allocation2], 16 }
  0xf0   : > { %712 = vsyncadd (%p424_p6), [#allocation2], 4294967280 }
  0xf1   : > { %714 = dma.done.wait (%p424_p6), [#allocation2 + $0x1], 16 }
  0xf2   : > { %716 = vsyncadd (%p424_p6), [#allocation2 + $0x1], 4294967280 }
  0xf3   : > { %718 = dma.done.wait (%p424_p6), [#allocation2 + $0x2], 16 }
  0xf4   : > { %720 = vsyncadd (%p424_p6), [#allocation2 + $0x2], 4294967280 }
  0xf5   : > { %722 = dma.done.wait (%p424_p6), [#allocation2 + $0x3], 16 }
  0xf6   : > { %724 = vsyncadd (%p424_p6), [#allocation2 + $0x3], 4294967280 }
  0xf7   : > { %726 = dma.done.wait (%p424_p6), [#allocation2 + $0x4], 16 }
  0xf8   : > { %728 = vsyncadd (%p424_p6), [#allocation2 + $0x4], 4294967280 }
  0xf9   : > { %730 = dma.done.wait (%p424_p6), [#allocation2 + $0x5], 16 }
  0xfa   : > { %732 = vsyncadd (%p424_p6), [#allocation2 + $0x5], 4294967280 }
  0xfb   : > { %734 = dma.done.wait (%p424_p6), [#allocation2 + $0x6], 16 }
  0xfc   : > { %736 = vsyncadd (%p424_p6), [#allocation2 + $0x6], 4294967280 }
  0xfd   : > { %738 = dma.done.wait (%p424_p6), [#allocation2 + $0x7], 16 }
  0xfe   : > { %740 = vsyncadd (%p424_p6), [#allocation2 + $0x7], 4294967280  ;;  %s224_s20 = scalar_lea.hbm %s1150_s2, %s818_s23  ;;  %p1109_p7 = pnand %p424_p6, %p805_p4 }
  0xff   : > { %s238_s24 = sand.u32 1, %s747_s12   ;;  %s1163_s18 = sand.u32 1, %s751_s13  }
 0x100   : > { %s213_s5 = scalar_lea.sflag [#allocation6], %s1163_s18  ;;  %s667_s17 = scalar_lea.vmem %s839_s29, 128 }
 0x101   : > { %p668_p13 = scmp.ne.s32.totalorder %s839_s29, %s667_s17  ;;  %p669_p0 = pneg %p1109_p7 }
 0x102   : > { %p676_p3 = scmp.lt.s32.totalorder %s869_s10, %s667_s17  ;;  %p1164_p8 = scmp.lt.s32.totalorder %s839_s29, %s866_s8 }
 0x103   : > { %p670_p1 = pnand %p669_p0, %p668_p13 }
 0x104   : > { %p677_p9 = por %p676_p3, %p1164_p8 }
 0x105   : > { %p671_p2 = pneg %p670_p1 }
 0x107   : > { %p678_p10 = pnand %p677_p9, %p671_p2 }
 0x109   : > { %681 = shalt.err (!%p678_p10)
}
 0x10a   : > { %s682_s19 = scalar_lea.hbm %s224_s20, 128  ;;  %s687_s12 = scalar_lea.hbm %s1150_s2, 256 }
 0x10b   : > { %p683_p4 = scmp.ne.s32.totalorder %s224_s20, %s682_s19  ;;  %p688_p12 = scmp.lt.s32.totalorder %s224_s20, %s1150_s2 }
 0x10c   : > { %p689_p5 = scmp.lt.s32.totalorder %s687_s12, %s682_s19 }
 0x10d   : > { %p685_p6 = pnand %p683_p4, %p669_p0 }
 0x10e   : > { %p690_p13 = por %p689_p5, %p688_p12 }
 0x10f   : > { %p686_p11 = pneg %p685_p6 }
 0x111   : > { %p691_p1 = pnand %p690_p13, %p686_p11 }
 0x113   : > { %694 = shalt.err (!%p691_p1)
}
 0x114   : > { %s1165_s8 = sld [smem:[#allocation45_spill]]  ;;  %p1167_p2 = scmp.ge.s32.totalorder %s755_s14, 1 }
 0x115   : > { %419 = dma.vmem_to_hbm [thread:$0]  (!%p1109_p7), %s839_s29, 128, %s224_s20, %s213_s5  }
 0x116   : > { %s239_s10 = scalar_lea.sflag [#allocation6], %s238_s24 }
 0x11a   : > { %p1166_p0 = scmp.ne.s32.totalorder %s1165_s8, 0 }
 0x11c   : > { %p421_p3 = pnand %p1167_p2, %p1166_p0 }
 0x11e   : > { %p422_p8 = pneg %p421_p3 }
 0x120   : > { %742 = dma.done.wait (%p422_p8), %s239_s10, 128  }
 0x121   : > { %744 = vsyncadd (%p422_p8), %s239_s10, 4294967168  ;;  %s1168_s14 = sld [smem:[#allocation43_spill]]  ;;  %s1170_s12 = smov %s751_s13 }
 0x122   : > { %s1169_s25 = sld [smem:[#allocation44_spill]] }
 0x127   : > { %p16_p5 = scmp.ge.s32.totalorder %s1168_s14, 3  }
 0x128   : > { %s1171_s13 = smov %s1169_s25 }
 0x129   :  { %18 = sbr.rel (!%p16_p5) target bundleno = 8 (0x8), region = 105 }
 0x12e   :  { %244 = vsyncpa [#allocation6], 1 }
 0x12f   :  { %246 = vsyncpa [#allocation6 + $0x1], 1 }
 0x130   :  { %247 = vsyncmov [#allocation2] }
 0x133   :  { %s248_s29 = vpop.sfrf %247 }
 0x134   :  { %p374_p7 = scmp.ne.s32.totalorder %s248_s29, 0 }
 0x136   :  { %252 = shalt.err (%p374_p7)  }
 0x137   :  { %254 = vsyncmov [#allocation2 + $0x1] }
 0x13a   :  { %s255_s16 = vpop.sfrf %254 }
 0x13b   :  { %p375_p9 = scmp.ne.s32.totalorder %s255_s16, 0 }
 0x13d   :  { %259 = shalt.err (%p375_p9)  }
 0x13e   :  { %261 = vsyncmov [#allocation2 + $0x2] }
 0x141   :  { %s262_s6 = vpop.sfrf %261 }
 0x142   :  { %p376_p10 = scmp.ne.s32.totalorder %s262_s6, 0 }
 0x144   :  { %266 = shalt.err (%p376_p10)  }
 0x145   :  { %268 = vsyncmov [#allocation2 + $0x3] }
 0x148   :  { %s269_s9 = vpop.sfrf %268 }
 0x149   :  { %p377_p4 = scmp.ne.s32.totalorder %s269_s9, 0 }
 0x14b   :  { %273 = shalt.err (%p377_p4)  }
 0x14c   :  { %275 = vsyncmov [#allocation2 + $0x4] }
 0x14f   :  { %s276_s14 = vpop.sfrf %275 }
 0x150   :  { %p378_p6 = scmp.ne.s32.totalorder %s276_s14, 0 }
 0x152   :  { %280 = shalt.err (%p378_p6)  }
 0x153   :  { %282 = vsyncmov [#allocation2 + $0x5] }
 0x156   :  { %s283_s1 = vpop.sfrf %282 }
 0x157   :  { %p379_p11 = scmp.ne.s32.totalorder %s283_s1, 0 }
 0x159   :  { %287 = shalt.err (%p379_p11)  }
 0x15a   :  { %289 = vsyncmov [#allocation2 + $0x6] }
 0x15d   :  { %s290_s2 = vpop.sfrf %289 }
 0x15e   :  { %p380_p12 = scmp.ne.s32.totalorder %s290_s2, 0 }
 0x160   :  { %294 = shalt.err (%p380_p12)  }
 0x161   :  { %296 = vsyncmov [#allocation2 + $0x7] }
 0x164   :  { %s297_s13 = vpop.sfrf %296 }
 0x165   :  { %p381_p13 = scmp.ne.s32.totalorder %s297_s13, 0 }
 0x167   :  { %301 = shalt.err (%p381_p13)  }

</bundles_post_ra>
